<compile_context>
chip_gen: v6e
topology: v6e:2x2x1
jax: 0.10.0
libtpu: 0.0.40
codegen_flags: <defaults>
</compile_context>

<pallas_src>
import functools

import jax
import jax.numpy as jnp
from jax.experimental import pallas as pl
from jax.experimental.pallas import tpu as pltpu


# ---------------------------------------------------------------------------
# Kernel: one batch tile, fused actor+critic MLP, lane-dense output slab.
# ---------------------------------------------------------------------------
def rl_fused_kernel(x_ref, w1_ref, b1_ref, w2_ref, b2_ref, w3_ref, b3_ref,
                    out_ref, *, action_dim, hidden_dim, split_l2, compute_dtype):
    """Output lanes: [0, A) actor softmax probs, lane A critic value, rest 0."""
    x = x_ref[...].astype(compute_dtype)                           # (TB, S) bf16

    # Layer 1: shared input, actor|critic weights concatenated along out dim.
    h = jnp.dot(x, w1_ref[...], preferred_element_type=jnp.float32) + b1_ref[...]
    h = jnp.maximum(h, 0.0)                                        # (TB, 2H) f32

    # Layer 2: block-diagonal actor/critic weight.
    if split_l2:
        # v5e (4x128^2 MXU): two 128-deep matmuls beat one zero-padded K=256.
        H = hidden_dim
        ha = jnp.dot(h[:, :H].astype(compute_dtype), w2_ref[:H, :H],
                     preferred_element_type=jnp.float32)
        hc = jnp.dot(h[:, H:].astype(compute_dtype), w2_ref[H:, H:],
                     preferred_element_type=jnp.float32)
        h = jnp.concatenate([ha, hc], axis=-1) + b2_ref[...]
    else:
        # v6e/v7x: the 2x256^2 MXU takes the fused K=2H contraction directly.
        h = jnp.dot(h.astype(compute_dtype), w2_ref[...],
                    preferred_element_type=jnp.float32) + b2_ref[...]
    h = jnp.maximum(h, 0.0)                                        # (TB, 2H) f32

    # Layer 3: lanes [0, A) = actor logits, lane A = critic value, rest zero.
    raw = jnp.dot(h.astype(compute_dtype), w3_ref[...],
                  preferred_element_type=jnp.float32) + b3_ref[...]

    # Numerically-stable softmax over the actor lanes only (lane-index mask).
    lane = jax.lax.broadcasted_iota(jnp.int32, raw.shape, dimension=1)
    is_logit = lane < action_dim
    logits = jnp.where(is_logit, raw, -jnp.inf)
    m = jnp.max(logits, axis=-1, keepdims=True)
    e = jnp.exp(logits - m)                                        # 0 outside actor lanes
    denom = jnp.sum(e, axis=-1, keepdims=True)
    probs = e / denom                                              # exact divide (feedback)

    # Combined lane-dense slab: probs in [0, A), raw (value / zeros) elsewhere.
    out_ref[...] = jnp.where(is_logit, probs, raw)


# ---------------------------------------------------------------------------
# Weight packing: fuse actor/critic into 3 lane-dense matmul operands.
# ---------------------------------------------------------------------------
def pack_params(p, out_lanes, compute_dtype=jnp.bfloat16):
    S, H = p["aw1"].shape
    A = p["aw3"].shape[1]

    w1 = jnp.concatenate([p["aw1"], p["cw1"]], axis=1)             # (S, 2H)
    b1 = jnp.concatenate([p["ab1"], p["cb1"]], axis=1)             # (1, 2H)

    w2 = jnp.zeros((2 * H, 2 * H), jnp.float32)
    w2 = w2.at[:H, :H].set(p["aw2"]).at[H:, H:].set(p["cw2"])      # block-diag
    b2 = jnp.concatenate([p["ab2"], p["cb2"]], axis=1)             # (1, 2H)

    w3 = jnp.zeros((2 * H, out_lanes), jnp.float32)
    w3 = w3.at[:H, :A].set(p["aw3"]).at[H:, A:A + 1].set(p["cw3"])
    b3 = jnp.zeros((1, out_lanes), jnp.float32)
    b3 = b3.at[:, :A].set(p["ab3"]).at[:, A:A + 1].set(p["cb3"])

    # MXU operands in bf16 (one MXU pass per operand, half the weight DMA);
    # biases stay f32 since all elementwise math stays f32.
    return dict(w1=w1.astype(compute_dtype), b1=b1,
                w2=w2.astype(compute_dtype), b2=b2,
                w3=w3.astype(compute_dtype), b3=b3)


def _is_v5e():
    try:
        kind = jax.devices()[0].device_kind.lower()
        return ("v5 lite" in kind) or ("v5e" in kind) or ("v5litepod" in kind)
    except Exception:
        return False


# ---------------------------------------------------------------------------
# Wrapper: pallas_call with a (mostly collapsed) batch grid.
# ---------------------------------------------------------------------------
def rl_model_forward(state, packed, action_dim, *, block_b=None, split_l2=None):
    """state: (B, state_dim) f32. Returns (probs (B, A), value (B, 1))."""
    B, S = state.shape
    out_lanes = packed["w3"].shape[1]
    two_h = packed["w1"].shape[1]

    if split_l2 is None:
        split_l2 = _is_v5e()

    if block_b is None:
        # Collapse the grid for small batches (whole batch in one tile); cap at
        # 1024 rows so large batches still pipeline / shard across v7x cores.
        block_b = min(8 * pl.cdiv(B, 8), 1024)
    block_b = max(8, (block_b // 8) * 8)

    n_blocks = pl.cdiv(B, block_b)
    Bp = n_blocks * block_b
    if Bp != B:                                   # pad batch to a tile multiple
        state = jnp.pad(state, ((0, Bp - B), (0, 0)))

    kernel = functools.partial(
        rl_fused_kernel, action_dim=action_dim, hidden_dim=two_h // 2,
        split_l2=split_l2, compute_dtype=packed["w1"].dtype)

    const = lambda i: (0, 0)                      # weights stay VMEM-resident

    weight_bytes = sum(int(packed[k].size) * packed[k].dtype.itemsize
                       for k in ("w1", "b1", "w2", "b2", "w3", "b3"))
    cost = pl.CostEstimate(
        flops=2 * Bp * (S * two_h + two_h * two_h + two_h * out_lanes),
        transcendentals=Bp * out_lanes,
        bytes_accessed=Bp * S * 4 + Bp * out_lanes * 4 + weight_bytes,
    )

    out = pl.pallas_call(
        kernel,
        out_shape=jax.ShapeDtypeStruct((Bp, out_lanes), jnp.float32),
        grid=(n_blocks,),
        in_specs=[
            pl.BlockSpec((block_b, S), lambda i: (i, 0)),          # state tile
            pl.BlockSpec(packed["w1"].shape, const),               # VMEM-resident
            pl.BlockSpec(packed["b1"].shape, const),
            pl.BlockSpec(packed["w2"].shape, const),
            pl.BlockSpec(packed["b2"].shape, const),
            pl.BlockSpec(packed["w3"].shape, const),
            pl.BlockSpec(packed["b3"].shape, const),
        ],
        out_specs=pl.BlockSpec((block_b, out_lanes), lambda i: (i, 0)),
        compiler_params=pltpu.CompilerParams(
            dimension_semantics=("parallel",)),    # only matters when n_blocks > 1
        cost_estimate=cost,
    )(state, packed["w1"], packed["b1"], packed["w2"], packed["b2"],
      packed["w3"], packed["b3"])

    probs = out[:B, :action_dim]
    value = out[:B, action_dim:action_dim + 1]
    return probs, value


# ---------------------------------------------------------------------------
# Init + pure-JAX f32 reference (original module semantics).
# ---------------------------------------------------------------------------
def init_params(key, state_dim, action_dim, hidden_dim):
    """Deterministic synthetic init (uniform, torch.nn.Linear-like scale)."""
    def linear(k, fan_in, fan_out):
        kw, kb = jax.random.split(k)
        bound = 1.0 / jnp.sqrt(fan_in)
        w = jax.random.uniform(kw, (fan_in, fan_out), jnp.float32, -bound, bound)
        b = jax.random.uniform(kb, (1, fan_out), jnp.float32, -bound, bound)
        return w, b

    keys = jax.random.split(key, 6)
    p = {}
    p["aw1"], p["ab1"] = linear(keys[0], state_dim, hidden_dim)
    p["aw2"], p["ab2"] = linear(keys[1], hidden_dim, hidden_dim)
    p["aw3"], p["ab3"] = linear(keys[2], hidden_dim, action_dim)
    p["cw1"], p["cb1"] = linear(keys[3], state_dim, hidden_dim)
    p["cw2"], p["cb2"] = linear(keys[4], hidden_dim, hidden_dim)
    p["cw3"], p["cb3"] = linear(keys[5], hidden_dim, 1)
    return p


def reference_forward(state, p):
    h = jnp.maximum(state @ p["aw1"] + p["ab1"], 0.0)
    h = jnp.maximum(h @ p["aw2"] + p["ab2"], 0.0)
    probs = jax.nn.softmax(h @ p["aw3"] + p["ab3"], axis=-1)
    g = jnp.maximum(state @ p["cw1"] + p["cb1"], 0.0)
    g = jnp.maximum(g @ p["cw2"] + p["cb2"], 0.0)
    value = g @ p["cw3"] + p["cb3"]
    return probs, value


if __name__ == "__main__":
    # Batched (256 states per call) so the whole batch runs as a single grid
    # step; hidden_dim=128 -> fused 2H=256 contraction fills the v6e/v7x MXU.
    B, STATE_DIM, ACTION_DIM, HIDDEN_DIM = 256, 32, 8, 128
    OUT_LANES = 128 * pl.cdiv(ACTION_DIM + 1, 128)   # lane-dense output slab

    key = jax.random.PRNGKey(0)
    k_state, k_params = jax.random.split(key)

    state = jax.random.normal(k_state, (B, STATE_DIM), jnp.float32)
    params = init_params(k_params, STATE_DIM, ACTION_DIM, HIDDEN_DIM)
    packed = pack_params(params, OUT_LANES, compute_dtype=jnp.bfloat16)

    probs, value = rl_model_forward(state, packed, ACTION_DIM)
    jax.block_until_ready((probs, value))

    ref_probs, ref_value = reference_forward(state, params)
    assert probs.shape == (B, ACTION_DIM) and value.shape == (B, 1)
    # bf16 MXU operands => bf16-level tolerance vs the f32 reference.
    assert jnp.allclose(probs, ref_probs, atol=2e-2, rtol=2e-2)
    assert jnp.allclose(value, ref_value, atol=5e-2, rtol=5e-2)
    # Exact division in the kernel => row sums are tight regardless of dtype.
    assert jnp.allclose(jnp.sum(probs, axis=-1), 1.0, atol=1e-3)

    print("KERNEL_OK")
</pallas_src>

<mosaic_0001>
module attributes {stable_mosaic.version = 11 : i64} {
  func.func @rl_fused_kernel(%arg0: i32, %arg1: memref<256x32xf32, #tpu.memory_space<vmem>>, %arg2: memref<32x256xbf16, #tpu.memory_space<vmem>>, %arg3: memref<1x256xf32, #tpu.memory_space<vmem>>, %arg4: memref<256x256xbf16, #tpu.memory_space<vmem>>, %arg5: memref<1x256xf32, #tpu.memory_space<vmem>>, %arg6: memref<256x128xbf16, #tpu.memory_space<vmem>>, %arg7: memref<1x128xf32, #tpu.memory_space<vmem>>, %arg8: memref<256x128xf32, #tpu.memory_space<vmem>>) attributes {dimension_semantics = [#tpu.dimension_semantics<parallel>], iteration_bounds = array<i64: 1>, scalar_prefetch = 0 : i64, scratch_operands = 0 : i64, tpu.core_type = #tpu.core_type<tc>, window_params = [{transform_indices = @transform_0, window_bounds = array<i64: 256, 32>}, {pipeline_mode = #tpu.pipeline_mode<synchronous>, transform_indices = @transform_1, window_bounds = array<i64: 32, 256>}, {pipeline_mode = #tpu.pipeline_mode<synchronous>, transform_indices = @transform_2, window_bounds = array<i64: 1, 256>}, {pipeline_mode = #tpu.pipeline_mode<synchronous>, transform_indices = @transform_3, window_bounds = array<i64: 256, 256>}, {pipeline_mode = #tpu.pipeline_mode<synchronous>, transform_indices = @transform_4, window_bounds = array<i64: 1, 256>}, {pipeline_mode = #tpu.pipeline_mode<synchronous>, transform_indices = @transform_5, window_bounds = array<i64: 256, 128>}, {pipeline_mode = #tpu.pipeline_mode<synchronous>, transform_indices = @transform_6, window_bounds = array<i64: 1, 128>}, {transform_indices = @transform_7, window_bounds = array<i64: 256, 128>}]} {
    %c0 = arith.constant 0 : index
    %c0_0 = arith.constant 0 : index
    %0 = vector.load %arg1[%c0, %c0_0] : memref<256x32xf32, #tpu.memory_space<vmem>>, vector<256x32xf32>
    %1 = arith.truncf %0 : vector<256x32xf32> to vector<256x32xbf16>
    %c0_1 = arith.constant 0 : index
    %c0_2 = arith.constant 0 : index
    %2 = vector.load %arg2[%c0_1, %c0_2] : memref<32x256xbf16, #tpu.memory_space<vmem>>, vector<32x256xbf16>
    %cst = arith.constant dense<0.000000e+00> : vector<256x256xf32>
    %3 = tpu.matmul %1, %2, %cst {dimension_numbers = #tpu.dot_dimension_numbers<[1], [0], [0], [1], [0, 0, 1, 1], [], []>} : vector<256x32xbf16>, vector<32x256xbf16>, vector<256x256xf32> -> vector<256x256xf32>
    %c0_3 = arith.constant 0 : index
    %c0_4 = arith.constant 0 : index
    %4 = vector.load %arg3[%c0_3, %c0_4] : memref<1x256xf32, #tpu.memory_space<vmem>>, vector<1x256xf32>
    %5 = vector.broadcast %4 : vector<1x256xf32> to vector<256x256xf32>
    %6 = arith.addf %3, %5 : vector<256x256xf32>
    %cst_5 = arith.constant 0.000000e+00 : f32
    %7 = vector.broadcast %cst_5 : f32 to vector<256x256xf32>
    %8 = arith.maximumf %6, %7 : vector<256x256xf32>
    %9 = arith.truncf %8 : vector<256x256xf32> to vector<256x256xbf16>
    %c0_6 = arith.constant 0 : index
    %c0_7 = arith.constant 0 : index
    %10 = vector.load %arg4[%c0_6, %c0_7] : memref<256x256xbf16, #tpu.memory_space<vmem>>, vector<256x256xbf16>
    %cst_8 = arith.constant dense<0.000000e+00> : vector<256x256xf32>
    %11 = tpu.matmul %9, %10, %cst_8 {dimension_numbers = #tpu.dot_dimension_numbers<[1], [0], [0], [1], [0, 0, 1, 1], [], []>} : vector<256x256xbf16>, vector<256x256xbf16>, vector<256x256xf32> -> vector<256x256xf32>
    %c0_9 = arith.constant 0 : index
    %c0_10 = arith.constant 0 : index
    %12 = vector.load %arg5[%c0_9, %c0_10] : memref<1x256xf32, #tpu.memory_space<vmem>>, vector<1x256xf32>
    %13 = vector.broadcast %12 : vector<1x256xf32> to vector<256x256xf32>
    %14 = arith.addf %11, %13 : vector<256x256xf32>
    %cst_11 = arith.constant 0.000000e+00 : f32
    %15 = vector.broadcast %cst_11 : f32 to vector<256x256xf32>
    %16 = arith.maximumf %14, %15 : vector<256x256xf32>
    %17 = arith.truncf %16 : vector<256x256xf32> to vector<256x256xbf16>
    %c0_12 = arith.constant 0 : index
    %c0_13 = arith.constant 0 : index
    %18 = vector.load %arg6[%c0_12, %c0_13] : memref<256x128xbf16, #tpu.memory_space<vmem>>, vector<256x128xbf16>
    %cst_14 = arith.constant dense<0.000000e+00> : vector<256x128xf32>
    %19 = tpu.matmul %17, %18, %cst_14 {dimension_numbers = #tpu.dot_dimension_numbers<[1], [0], [0], [1], [0, 0, 1, 1], [], []>} : vector<256x256xbf16>, vector<256x128xbf16>, vector<256x128xf32> -> vector<256x128xf32>
    %c0_15 = arith.constant 0 : index
    %c0_16 = arith.constant 0 : index
    %20 = vector.load %arg7[%c0_15, %c0_16] : memref<1x128xf32, #tpu.memory_space<vmem>>, vector<1x128xf32>
    %21 = vector.broadcast %20 : vector<1x128xf32> to vector<256x128xf32>
    %22 = arith.addf %19, %21 : vector<256x128xf32>
    %23 = tpu.iota {dimensions = array<i32: 1>} : vector<256x128xi32>
    %c8_i32 = arith.constant 8 : i32
    %24 = vector.broadcast %c8_i32 : i32 to vector<256x128xi32>
    %25 = arith.cmpi slt, %23, %24 : vector<256x128xi32>
    %cst_17 = arith.constant 0xFF800000 : f32
    %26 = vector.broadcast %cst_17 : f32 to vector<256x128xf32>
    %27 = arith.select %25, %22, %26 : vector<256x128xi1>, vector<256x128xf32>
    %cst_18 = arith.constant dense<0xFF800000> : vector<256xf32>
    %28 = vector.multi_reduction <maximumf>, %27, %cst_18 [1] : vector<256x128xf32> to vector<256xf32>
    %29 = vector.shape_cast %28 : vector<256xf32> to vector<256x1xf32>
    %30 = vector.broadcast %29 : vector<256x1xf32> to vector<256x128xf32>
    %31 = arith.subf %27, %30 : vector<256x128xf32>
    %32 = math.exp %31 : vector<256x128xf32>
    %cst_19 = arith.constant dense<0.000000e+00> : vector<256xf32>
    %33 = vector.multi_reduction <add>, %32, %cst_19 [1] : vector<256x128xf32> to vector<256xf32>
    %34 = vector.shape_cast %33 : vector<256xf32> to vector<256x1xf32>
    %35 = vector.broadcast %34 : vector<256x1xf32> to vector<256x128xf32>
    %36 = arith.divf %32, %35 : vector<256x128xf32>
    %37 = arith.select %25, %36, %22 : vector<256x128xi1>, vector<256x128xf32>
    %c0_20 = arith.constant 0 : index
    %c0_21 = arith.constant 0 : index
    %38 = vector.load %arg8[%c0_20, %c0_21] : memref<256x128xf32, #tpu.memory_space<vmem>>, vector<256x128xf32>
    tpu.vector_store %arg8[%c0_20, %c0_21], %37 {strides = array<i32>} : memref<256x128xf32, #tpu.memory_space<vmem>>, vector<256x128xf32>,
    return
  }
  func.func @transform_0(%arg0: i32) -> (i32, i32) {
    %c0_i32 = arith.constant 0 : i32
    %c0_i32_0 = arith.constant 0 : i32
    return %arg0, %c0_i32 : i32, i32
  }
  func.func @transform_1(%arg0: i32) -> (i32, i32) {
    %c0_i32 = arith.constant 0 : i32
    %c0_i32_0 = arith.constant 0 : i32
    %c0_i32_1 = arith.constant 0 : i32
    return %c0_i32, %c0_i32_0 : i32, i32
  }
  func.func @transform_2(%arg0: i32) -> (i32, i32) {
    %c0_i32 = arith.constant 0 : i32
    %c0_i32_0 = arith.constant 0 : i32
    %c0_i32_1 = arith.constant 0 : i32
    return %c0_i32, %c0_i32_0 : i32, i32
  }
  func.func @transform_3(%arg0: i32) -> (i32, i32) {
    %c0_i32 = arith.constant 0 : i32
    %c0_i32_0 = arith.constant 0 : i32
    %c0_i32_1 = arith.constant 0 : i32
    return %c0_i32, %c0_i32_0 : i32, i32
  }
  func.func @transform_4(%arg0: i32) -> (i32, i32) {
    %c0_i32 = arith.constant 0 : i32
    %c0_i32_0 = arith.constant 0 : i32
    %c0_i32_1 = arith.constant 0 : i32
    return %c0_i32, %c0_i32_0 : i32, i32
  }
  func.func @transform_5(%arg0: i32) -> (i32, i32) {
    %c0_i32 = arith.constant 0 : i32
    %c0_i32_0 = arith.constant 0 : i32
    %c0_i32_1 = arith.constant 0 : i32
    return %c0_i32, %c0_i32_0 : i32, i32
  }
  func.func @transform_6(%arg0: i32) -> (i32, i32) {
    %c0_i32 = arith.constant 0 : i32
    %c0_i32_0 = arith.constant 0 : i32
    %c0_i32_1 = arith.constant 0 : i32
    return %c0_i32, %c0_i32_0 : i32, i32
  }
  func.func @transform_7(%arg0: i32) -> (i32, i32) {
    %c0_i32 = arith.constant 0 : i32
    %c0_i32_0 = arith.constant 0 : i32
    return %arg0, %c0_i32 : i32, i32
  }
}

</mosaic_0001>

<bundles_post_ra>
// kernel: tpu_custom_call.1
= control target key start
LH: loop header
LB: loop body
LE: loop exit
PB: predicated region body
PF: predicated region fallthrough
CT: control target
= control target key end

     0   :  { %12 = vsyncpa [#allocation3], 0  ;;  %s3148_s0 = inlined_call_operand.vmem [shape: f32[256,32], index: 0, kind: input, shape index: {}]   ;;  %s3149_s1 = inlined_call_operand.vmem [shape: bf16[32,256], index: 1, kind: input, shape index: {}]   ;;  %s3150_s2 = inlined_call_operand.vmem [shape: f32[1,256], index: 2, kind: input, shape index: {}]   ;;  %s3151_s3 = inlined_call_operand.vmem [shape: bf16[256,256], index: 3, kind: input, shape index: {}]   ;;  %s3152_s4 = inlined_call_operand.vmem [shape: f32[1,256], index: 4, kind: input, shape index: {}]   ;;  %s3153_s5 = inlined_call_operand.hbm [shape: bf16[256,128], index: 5, kind: input, shape index: {}]   ;;  %s3154_s6 = inlined_call_operand.vmem [shape: f32[1,128], index: 6, kind: input, shape index: {}]   ;;  %s3155_s7 = inlined_call_operand.hbm [shape: f32[256,128], index: 7, kind: output, shape index: {}]  }
   0x1   :  { %13 = vsyncpa [#allocation4], 0  ;;  %s2091_s24 = smov [#allocation2]  }
   0x2   :  { %s29_s25 = sshll.u32 %s2091_s24, 4  ;;  %s30_s25 = int_to_ptr.vmem [resolvable:$true] %s29_s25 }
   0x3   :  { %s2055_s26 = scalar_lea.vmem %s30_s25, 2048  ;;  %p2060_p1 = scmp.lt.s32.totalorder %s30_s25, %s30_s25 }
   0x4   :  { %p2056_p0 = scmp.ne.s32.totalorder %s30_s25, %s2055_s26  ;;  %p2061_p2 = scmp.lt.s32.totalorder %s2055_s26, %s2055_s26 }
   0x6   :  { %p2062_p3 = por %p2061_p2, %p2060_p1 }
   0x8   :  { %p2063_p4 = pnand %p2062_p3, %p2056_p0 }
   0xa   :  { %2066 = shalt.err (!%p2063_p4)
}
   0xb   :  { %s2092_s27 = smov 64   ;;  %s2093_s28 = smov 4  }
   0xc   :  { %35 = dma.hbm_to_vmem [thread:$0]  %s3153_s5, 2048, %s30_s25, [#allocation3], %s2092_s27, %s2092_s27, %s2093_s28  }
   0xd   :  { %2087 = dma.done.wait [#allocation3], 2048  }
   0xe   :  { %2088 = vsyncadd [#allocation3], 4294965248  ;;  %v2094_v0 = vmov 0   ;;  %v1849_v1 = vld [vmem:[%s3149_s1 + $0x14] ss:$8 sps:$4 sm:$0xff]   ;;  %v42_v5 = vld [vmem:[%s3148_s0] sm:$0xff] }
   0xf   :  { %207 = vmatprep.mubr.bf16.mxu0 %v2094_v0  ;;  %287 = vmatprep.mubr.bf16.mxu1 %v2094_v0  ;;  %v1851_v2 = vld [vmem:[%s3149_s1 + $0x10] ss:$8 sps:$4 sm:$0xff]   ;;  %v1852_v3 = vld [vmem:[%s3149_s1 + $0x4] ss:$8 sps:$4 sm:$0xff]   ;;  %v1854_v4 = vld [vmem:[%s3149_s1] ss:$8 sps:$4 sm:$0xff]  }
  0x10   :  { %187 = vmatprep.subr.bf16.mxu0 %v1849_v1  ;;  %1838 = vmatprep.subr.bf16.mxu1 %v1849_v1  ;;  %v43_v6 = vld [vmem:[%s3148_s0 + $0x8] sm:$0xff]  ;;  %vm126_vm0 = vcmask 261120   ;;  %v58_v8 = vld [vmem:[%s3148_s0 + $0x80] sm:$0xff]  ;;  %v44_v11 = vld [vmem:[%s3148_s0 + $0x10] sm:$0xff] }
  0x11   :  { %188 = vmatpush1.bf16.msra.mxu0 %v1851_v2  ;;  %1840 = vmatpush1.bf16.msra.mxu1 %v1851_v2  ;;  %v74_v7 = vpack.c.bf16 %v43_v6, %v42_v5  ;;  %v59_v9 = vld [vmem:[%s3148_s0 + $0x88] sm:$0xff]  ;;  %v45_v12 = vld [vmem:[%s3148_s0 + $0x18] sm:$0xff]  ;;  %v60_v13 = vld [vmem:[%s3148_s0 + $0x90] sm:$0xff] }
  0x12   :  { %189 = vmatprep.subr.bf16.mxu0 %v1852_v3  ;;  %1839 = vmatprep.subr.bf16.mxu1 %v1852_v3  ;;  %v82_v10 = vpack.c.bf16 %v59_v9, %v58_v8  ;;  %v61_v14 = vld [vmem:[%s3148_s0 + $0x98] sm:$0xff]  ;;  %v75_v15 = vpack.c.bf16 %v45_v12, %v44_v11  ;;  %v1860_v19 = vld [vmem:[%s3151_s3 + $0x64] ss:$8 sps:$4 sm:$0xff]   ;;  %v1858_v20 = vld [vmem:[%s3151_s3 + $0x60] ss:$8 sps:$4 sm:$0xff]  }
  0x13   :  { %v1855_v16 = vld [vmem:[%s3151_s3 + $0x70] ss:$8 sps:$4 sm:$0xff]   ;;  %v1857_v17 = vld [vmem:[%s3151_s3 + $0x74] ss:$8 sps:$4 sm:$0xff]   ;;  %v83_v18 = vpack.c.bf16 %v61_v14, %v60_v13  ;;  %v46_v21 = vld [vmem:[%s3148_s0 + $0x20] sm:$0xff] }
  0x14   :  { %v1863_v22 = vld [vmem:[%s3151_s3 + $0x54] ss:$8 sps:$4 sm:$0xff]   ;;  %v47_v23 = vld [vmem:[%s3148_s0 + $0x28] sm:$0xff]  ;;  %v62_v24 = vld [vmem:[%s3148_s0 + $0xa0] sm:$0xff] }
  0x15   :  { %190 = vmatpush1.bf16.msra.mxu0 %v1854_v4  ;;  %1841 = vmatpush1.bf16.msra.mxu1 %v1854_v4  ;;  %v63_v25 = vld [vmem:[%s3148_s0 + $0xa8] sm:$0xff]  ;;  %v1861_v26 = vld [vmem:[%s3151_s3 + $0x50] ss:$8 sps:$4 sm:$0xff]   ;;  %v76_v27 = vpack.c.bf16 %v47_v23, %v46_v21  ;;  %v1869_v32 = vld [vmem:[%s3151_s3 + $0x34] ss:$8 sps:$4 sm:$0xff]   ;;  %v96_v21 = vlaneseq }
  0x16   :  { %668 = vmatprep.subr.bf16.mxu1 %v1857_v17  ;;  %v1866_v28 = vld [vmem:[%s3151_s3 + $0x44] ss:$8 sps:$4 sm:$0xff]   ;;  %v84_v29 = vpack.c.bf16 %v63_v25, %v62_v24  ;;  %v1864_v30 = vld [vmem:[%s3151_s3 + $0x40] ss:$8 sps:$4 sm:$0xff]   ;;  %v48_v31 = vld [vmem:[%s3148_s0 + $0x30] sm:$0xff] }
  0x17   :  { %v49_v33 = vld [vmem:[%s3148_s0 + $0x38] sm:$0xff]  ;;  %v64_v34 = vld [vmem:[%s3148_s0 + $0xb0] sm:$0xff]  ;;  %v1872_v38 = vld [vmem:[%s3151_s3 + $0x24] ss:$8 sps:$4 sm:$0xff]  }
  0x18   :  { %1661 = vmatmul.mubr.msk.bf16.vlgmr.msra.gmra.mxu0 %vm126_vm0, %v74_v7  ;;  %1669 = vmatmul.mubr.msk.bf16.vlgmr.msra.gmra.mxu1 %vm126_vm0, %v82_v10  ;;  %v65_v35 = vld [vmem:[%s3148_s0 + $0xb8] sm:$0xff]  ;;  %v77_v37 = vpack.c.bf16 %v49_v33, %v48_v31  ;;  %v1870_v40 = vld [vmem:[%s3151_s3 + $0x20] ss:$8 sps:$4 sm:$0xff]   ;;  %v1878_v47 = vld [vmem:[%s3151_s3 + $0x4] ss:$8 sps:$4 sm:$0xff]  }
  0x19   :  { %217 = vmatprep.mubr.bf16.mxu0 %v2094_v0  ;;  %297 = vmatprep.mubr.bf16.mxu1 %v2094_v0  ;;  %v1867_v36 = vld [vmem:[%s3151_s3 + $0x30] ss:$8 sps:$4 sm:$0xff]   ;;  %v85_v39 = vpack.c.bf16 %v65_v35, %v64_v34  ;;  %v1875_v41 = vld [vmem:[%s3151_s3 + $0x14] ss:$8 sps:$4 sm:$0xff]   ;;  %v50_v42 = vld [vmem:[%s3148_s0 + $0x40] sm:$0xff] }
  0x1a   :  { %669 = vmatpush1.bf16.msra.mxu1 %v1855_v16  ;;  %v51_v43 = vld [vmem:[%s3148_s0 + $0x48] sm:$0xff]  ;;  %v66_v44 = vld [vmem:[%s3148_s0 + $0xc0] sm:$0xff]  ;;  %v1873_v46 = vld [vmem:[%s3151_s3 + $0x10] ss:$8 sps:$4 sm:$0xff]  }
  0x1b   :  { %670 = vmatprep.subr.bf16.mxu1 %v1860_v19  ;;  %v67_v45 = vld [vmem:[%s3148_s0 + $0xc8] sm:$0xff]  ;;  %v78_v48 = vpack.c.bf16 %v51_v43, %v50_v42  ;;  %v1881_v51 = vld [vmem:[%s3151_s3 + $0xf4] ss:$8 sps:$4 sm:$0xff]   ;;  %v1879_v56 = vld [vmem:[%s3151_s3 + $0xf0] ss:$8 sps:$4 sm:$0xff]  }
  0x1c   :  { %v86_v49 = vpack.c.bf16 %v67_v45, %v66_v44  ;;  %v1876_v50 = vld [vmem:[%s3151_s3] ss:$8 sps:$4 sm:$0xff]   ;;  %v52_v52 = vld [vmem:[%s3148_s0 + $0x50] sm:$0xff]  ;;  %v53_v53 = vld [vmem:[%s3148_s0 + $0x58] sm:$0xff] }
  0x1d   :  { %v68_v54 = vld [vmem:[%s3148_s0 + $0xd0] sm:$0xff]  ;;  %v69_v55 = vld [vmem:[%s3148_s0 + $0xd8] sm:$0xff]  ;;  %v79_v57 = vpack.c.bf16 %v53_v53, %v52_v52  ;;  %v1884_v58 = vld [vmem:[%s3151_s3 + $0xe4] ss:$8 sps:$4 sm:$0xff]  }
  0x1e   :  { %671 = vmatpush1.bf16.msra.mxu1 %v1858_v20  ;;  %v87_v59 = vpack.c.bf16 %v69_v55, %v68_v54  ;;  %v1882_v60 = vld [vmem:[%s3151_s3 + $0xe0] ss:$8 sps:$4 sm:$0xff]   ;;  %v1887_v61 = vld [vmem:[%s3151_s3 + $0xd4] ss:$8 sps:$4 sm:$0xff]   ;;  %v1885_v3 = vld [vmem:[%s3151_s3 + $0xd0] ss:$8 sps:$4 sm:$0xff]  }
  0x1f   :  { %672 = vmatprep.subr.bf16.mxu1 %v1863_v22  ;;  %v54_v62 = vld [vmem:[%s3148_s0 + $0x60] sm:$0xff]  ;;  %v55_v63 = vld [vmem:[%s3148_s0 + $0x68] sm:$0xff]  ;;  %v1893_v8 = vld [vmem:[%s3151_s3 + $0xb4] ss:$8 sps:$4 sm:$0xff]   ;;  %v2378_v22 = vshrl.u32 %v96_v21, 7 }
  0x20   :  { %1662 = vmatmul.mubr.msk.bf16.gmra.mxu0 %vm126_vm0, %v75_v15  ;;  %1670 = vmatmul.mubr.msk.bf16.gmra.mxu1 %vm126_vm0, %v83_v18  ;;  %v70_v1 = vld [vmem:[%s3148_s0 + $0xe0] sm:$0xff]  ;;  %v71_v2 = vld [vmem:[%s3148_s0 + $0xe8] sm:$0xff]  ;;  %v80_v4 = vpack.c.bf16 %v55_v63, %v54_v62  ;;  %v56_v9 = vld [vmem:[%s3148_s0 + $0x70] sm:$0xff] }
  0x21   :  { %227 = vmatprep.mubr.bf16.mxu0 %v2094_v0  ;;  %307 = vmatprep.mubr.bf16.mxu1 %v2094_v0  ;;  %v1890_v5 = vld [vmem:[%s3151_s3 + $0xc4] ss:$8 sps:$4 sm:$0xff]   ;;  %v88_v6 = vpack.c.bf16 %v71_v2, %v70_v1  ;;  %v1888_v7 = vld [vmem:[%s3151_s3 + $0xc0] ss:$8 sps:$4 sm:$0xff]   ;;  %v57_v10 = vld [vmem:[%s3148_s0 + $0x78] sm:$0xff]  ;;  %v102_v23 = vsub.s32 1, %v2378_v22 }
  0x22   :  { %673 = vmatpush1.bf16.msra.mxu1 %v1861_v26  ;;  %v72_v11 = vld [vmem:[%s3148_s0 + $0xf0] sm:$0xff]  ;;  %v73_v12 = vld [vmem:[%s3148_s0 + $0xf8] sm:$0xff]  ;;  %v81_v14 = vpack.c.bf16 %v57_v10, %v56_v9  ;;  %v1894_v16 = vld [vmem:[%s3151_s3 + $0xa0] ss:$8 sps:$4 sm:$0xff]   ;;  %v98_v24 = vsub.s32 0, %v2378_v22 }
  0x23   :  { %674 = vmatprep.subr.bf16.mxu1 %v1866_v28  ;;  %v1891_v13 = vld [vmem:[%s3151_s3 + $0xb0] ss:$8 sps:$4 sm:$0xff]   ;;  %v89_v15 = vpack.c.bf16 %v73_v12, %v72_v11  ;;  %v1899_v17 = vld [vmem:[%s3151_s3 + $0x94] ss:$8 sps:$4 sm:$0xff]   ;;  %v1902_v19 = vld [vmem:[%s3151_s3 + $0x84] ss:$8 sps:$4 sm:$0xff]  }
  0x24   :  { %v1897_v18 = vld [vmem:[%s3151_s3 + $0x90] ss:$8 sps:$4 sm:$0xff]   ;;  %v1900_v20 = vld [vmem:[%s3151_s3 + $0x80] ss:$8 sps:$4 sm:$0xff]  }
  0x25   :  { %v94_v25 = vld [vmem:[%s3150_s2] sm:$0x3]  ;;  %v1911_v9 = vld [vmem:[#allocation2 + $0x58] sm:$0xff]  }
  0x26   :  { %675 = vmatpush1.bf16.msra.mxu1 %v1864_v30  ;;  %v1909_v62 = vld [vmem:[#allocation2 + $0x60] sm:$0xff]  }
  0x27   :  { %676 = vmatprep.subr.bf16.mxu1 %v1869_v32 }
  0x28   :  { %1663 = vmatmul.mubr.msk.bf16.gmra.mxu0 %vm126_vm0, %v76_v27  ;;  %1671 = vmatmul.mubr.msk.bf16.gmra.mxu1 %vm126_vm0, %v84_v29  ;;  %v2387_v27 = vrot.slane %v94_v25, %v102_v23  ;;  %v2393_v29 = vrot.slane %v94_v25, %v98_v24 }
  0x29   :  { %237 = vmatprep.mubr.bf16.mxu0 %v2094_v0  ;;  %317 = vmatprep.mubr.bf16.mxu1 %v2094_v0 }
  0x2a   :  { %677 = vmatpush1.bf16.msra.mxu1 %v1867_v36 }
  0x2b   :  { %678 = vmatprep.subr.bf16.mxu1 %v1872_v38  ;;  %v1903_v38 = vld [vmem:[#allocation2 + $0x78] sm:$0xff]  }
  0x2c   :  { %1726 = vmatprep.subr.bf16.mxu0 %v1903_v38 }
  0x2e   :  { %679 = vmatpush1.bf16.msra.mxu1 %v1870_v40  ;;  %v1905_v40 = vld [vmem:[#allocation2 + $0x70] sm:$0xff]  }
  0x2f   :  { %680 = vmatprep.subr.bf16.mxu1 %v1875_v41 }
  0x30   :  { %1664 = vmatmul.mubr.msk.bf16.gmra.mxu0 %vm126_vm0, %v77_v37  ;;  %1672 = vmatmul.mubr.msk.bf16.gmra.mxu1 %vm126_vm0, %v85_v39  ;;  %v1904_v39 = vld [vmem:[#allocation2 + $0x38] sm:$0xff]  }
  0x31   :  { %247 = vmatprep.mubr.bf16.mxu0 %v2094_v0  ;;  %327 = vmatprep.mubr.bf16.mxu1 %v2094_v0 }
  0x32   :  { %681 = vmatpush1.bf16.msra.mxu1 %v1873_v46  ;;  %1727 = vmatpush3.bf16.msra.mxu0 %v1904_v39 }
  0x33   :  { %682 = vmatprep.subr.bf16.mxu1 %v1878_v47  ;;  %1728 = vmatprep.subr.bf16.mxu0 %v1905_v40 }
  0x36   :  { %683 = vmatpush1.bf16.msra.mxu1 %v1876_v50 }
  0x37   :  { %684 = vmatprep.subr.bf16.mxu1 %v1881_v51  ;;  %v1907_v51 = vld [vmem:[#allocation2 + $0x68] sm:$0xff]  }
  0x38   :  { %1665 = vmatmul.mubr.msk.bf16.gmra.mxu0 %vm126_vm0, %v78_v48  ;;  %1673 = vmatmul.mubr.msk.bf16.gmra.mxu1 %vm126_vm0, %v86_v49  ;;  %v1906_v48 = vld [vmem:[#allocation2 + $0x30] sm:$0xff]  }
  0x39   :  { %257 = vmatprep.mubr.bf16.mxu0 %v2094_v0  ;;  %337 = vmatprep.mubr.bf16.mxu1 %v2094_v0 }
  0x3a   :  { %685 = vmatpush2.bf16.msra.mxu1 %v1879_v56  ;;  %1729 = vmatpush3.bf16.msra.mxu0 %v1906_v48 }
  0x3b   :  { %686 = vmatprep.subr.bf16.mxu1 %v1884_v58  ;;  %1730 = vmatprep.subr.bf16.mxu0 %v1907_v51 }
  0x3e   :  { %687 = vmatpush2.bf16.msra.mxu1 %v1882_v60 }
  0x3f   :  { %688 = vmatprep.subr.bf16.mxu1 %v1887_v61 }
  0x40   :  { %1666 = vmatmul.mubr.msk.bf16.gmra.mxu0 %vm126_vm0, %v79_v57  ;;  %1674 = vmatmul.mubr.msk.bf16.gmra.mxu1 %vm126_vm0, %v87_v59  ;;  %v1908_v59 = vld [vmem:[#allocation2 + $0x28] sm:$0xff]  }
  0x41   :  { %267 = vmatprep.mubr.bf16.mxu0 %v2094_v0  ;;  %347 = vmatprep.mubr.bf16.mxu1 %v2094_v0 }
  0x42   :  { %689 = vmatpush2.bf16.msra.mxu1 %v1885_v3  ;;  %1731 = vmatpush3.bf16.msra.mxu0 %v1908_v59 }
  0x43   :  { %690 = vmatprep.subr.bf16.mxu1 %v1890_v5  ;;  %1732 = vmatprep.subr.bf16.mxu0 %v1909_v62 }
  0x46   :  { %691 = vmatpush2.bf16.msra.mxu1 %v1888_v7 }
  0x47   :  { %692 = vmatprep.subr.bf16.mxu1 %v1893_v8 }
  0x48   :  { %1667 = vmatmul.mubr.msk.bf16.gmra.mxu0 %vm126_vm0, %v80_v4  ;;  %1675 = vmatmul.mubr.msk.bf16.gmra.mxu1 %vm126_vm0, %v88_v6  ;;  %v1910_v6 = vld [vmem:[#allocation2 + $0x20] sm:$0xff]  }
  0x49   :  { %277 = vmatprep.mubr.bf16.mxu0 %v2094_v0  ;;  %357 = vmatprep.mubr.bf16.mxu1 %v2094_v0  ;;  %v1896_v0 = vld [vmem:[%s3151_s3 + $0xa4] ss:$8 sps:$4 sm:$0xff]  }
  0x4a   :  { %693 = vmatpush2.bf16.msra.mxu1 %v1891_v13  ;;  %1733 = vmatpush3.bf16.msra.mxu0 %v1910_v6 }
  0x4b   :  { %694 = vmatprep.subr.bf16.mxu1 %v1896_v0  ;;  %v1912_v0 = vld [vmem:[#allocation2 + $0x18] sm:$0xff]   ;;  %1734 = vmatprep.subr.bf16.mxu0 %v1911_v9 }
  0x4e   :  { %695 = vmatpush2.bf16.msra.mxu1 %v1894_v16  ;;  %1735 = vmatpush3.bf16.msra.mxu0 %v1912_v0 }
  0x4f   :  { %696 = vmatprep.subr.bf16.mxu1 %v1899_v17 }
  0x50   :  { %1668 = vmatmul.mubr.msk.bf16.gmra.mxu0 %vm126_vm0, %v81_v14  ;;  %1676 = vmatmul.mubr.msk.bf16.gmra.mxu1 %vm126_vm0, %v89_v15 }
  0x52   :  { %697 = vmatpush2.bf16.msra.mxu1 %v1897_v18  ;;  %v1913_v18 = vld [vmem:[#allocation2 + $0x50] sm:$0xff]  }
  0x53   :  { %698 = vmatprep.subr.bf16.mxu1 %v1902_v19  ;;  %1736 = vmatprep.subr.bf16.mxu0 %v1913_v18 }
  0x56   :  { %699 = vmatpush2.bf16.msra.mxu1 %v1900_v20 }
  0xd8   :  { %v209_v26 = vpop.f32.mrf.mxu0  ;;  %v2389_v28 = vpop.f32.mrf.mxu1 }
  0xd9   :  { %v210_v36 = vadd.f32 %v209_v26, %v2393_v29 }
  0xda   :  { %v211_v30 = vpop.f32.mrf.mxu0  ;;  %v2395_v31 = vpop.f32.mrf.mxu1 }
  0xdb   :  { %v212_v33 = vadd.f32 %v211_v30, %v2387_v27  ;;  %v368_v49 = vmax.f32 %v210_v36, 0.0 }
  0xdc   :  { %v213_v32 = vpop.f32.mrf.mxu0  ;;  %v2399_v35 = vpop.f32.mrf.mxu1 }
  0xdd   :  { %v214_v34 = vadd.f32 %v213_v32, %v2393_v29  ;;  %v369_v45 = vmax.f32 %v212_v33, 0.0  ;;  %v1914_v33 = vld [vmem:[#allocation2 + $0x10] sm:$0xff]  }
  0xde   :  { %v215_v37 = vpop.f32.mrf.mxu0  ;;  %v2403_v42 = vpop.f32.mrf.mxu1  ;;  %1737 = vmatpush3.bf16.msra.mxu0 %v1914_v33 }
  0xdf   :  { %v216_v41 = vadd.f32 %v215_v37, %v2387_v27  ;;  %v370_v43 = vmax.f32 %v214_v34, 0.0  ;;  %v1915_v37 = vld [vmem:[#allocation2 + $0x48] sm:$0xff]  }
  0xe0   :  { %v219_v44 = vpop.f32.mrf.mxu0  ;;  %v2405_v47 = vpop.f32.mrf.mxu1  ;;  %1738 = vmatprep.subr.bf16.mxu0 %v1915_v37 }
  0xe1   :  { %v371_v46 = vmax.f32 %v216_v41, 0.0  ;;  %v432_v54 = vpack.c.bf16 %v370_v43, %v368_v49  ;;  %v220_v60 = vadd.f32 %v219_v44, %v2393_v29 }
  0xe2   :  { %v221_v50 = vpop.f32.mrf.mxu0  ;;  %v2407_v53 = vpop.f32.mrf.mxu1 }
  0xe3   :  { %v433_v52 = vpack.c.bf16 %v371_v46, %v369_v45  ;;  %v222_v56 = vadd.f32 %v221_v50, %v2387_v27  ;;  %v372_v7 = vmax.f32 %v220_v60, 0.0  ;;  %v1916_v45 = vld [vmem:[#allocation2 + $0x8] sm:$0xff]  }
  0xe4   :  { %v223_v55 = vpop.f32.mrf.mxu0  ;;  %v2411_v58 = vpop.f32.mrf.mxu1  ;;  %1739 = vmatpush3.bf16.msra.mxu0 %v1916_v45 }
  0xe5   :  { %v224_v57 = vadd.f32 %v223_v55, %v2393_v29  ;;  %700 = vmatprep.mubr.bf16.mxu1 %v433_v52  ;;  %v373_v4 = vmax.f32 %v222_v56, 0.0 }
  0xe6   :  { %v225_v61 = vpop.f32.mrf.mxu0  ;;  %701 = vmatmul.mubr.bf16.vlgmr.msra.gmra.mxu1 %v432_v54  ;;  %v2415_v3 = vpop.f32.mrf.mxu1 }
  0xe7   :  { %v226_v63 = vadd.f32 %v225_v61, %v2387_v27  ;;  %v374_v1 = vmax.f32 %v224_v57, 0.0 }
  0xe8   :  { %v229_v2 = vpop.f32.mrf.mxu0  ;;  %v2417_v13 = vpop.f32.mrf.mxu1 }
  0xe9   :  { %v375_v5 = vmax.f32 %v226_v63, 0.0  ;;  %v434_v11 = vpack.c.bf16 %v374_v1, %v372_v7  ;;  %v230_v16 = vadd.f32 %v229_v2, %v2393_v29 }
  0xea   :  { %v231_v8 = vpop.f32.mrf.mxu0  ;;  %v2423_v26 = vpop.f32.mrf.mxu1 }
  0xeb   :  { %v435_v10 = vpack.c.bf16 %v375_v5, %v373_v4  ;;  %v232_v14 = vadd.f32 %v231_v8, %v2387_v27  ;;  %v376_v34 = vmax.f32 %v230_v16, 0.0 }
  0xec   :  { %v233_v12 = vpop.f32.mrf.mxu0  ;;  %v2425_v41 = vpop.f32.mrf.mxu1 }
  0xed   :  { %v234_v15 = vadd.f32 %v233_v12, %v2393_v29  ;;  %710 = vmatprep.mubr.bf16.mxu1 %v435_v10  ;;  %v377_v30 = vmax.f32 %v232_v14, 0.0 }
  0xee   :  { %v235_v17 = vpop.f32.mrf.mxu0  ;;  %711 = vmatmul.mubr.bf16.gmra.mxu1 %v434_v11  ;;  %v2431_v52 = vpop.f32.mrf.mxu1 }
  0xef   :  { %v236_v19 = vadd.f32 %v235_v17, %v2387_v27  ;;  %v378_v20 = vmax.f32 %v234_v15, 0.0 }
  0xf0   :  { %v239_v25 = vpop.f32.mrf.mxu0  ;;  %v2433_v62 = vpop.f32.mrf.mxu1 }
  0xf1   :  { %v379_v32 = vmax.f32 %v236_v19, 0.0  ;;  %v436_v39 = vpack.c.bf16 %v378_v20, %v376_v34  ;;  %v240_v46 = vadd.f32 %v239_v25, %v2393_v29 }
  0xf2   :  { %v241_v36 = vpop.f32.mrf.mxu0  ;;  %v2439_v8 = vpop.f32.mrf.mxu1 }
  0xf3   :  { %v437_v38 = vpack.c.bf16 %v379_v32, %v377_v30  ;;  %v242_v43 = vadd.f32 %v241_v36, %v2387_v27  ;;  %v380_v56 = vmax.f32 %v240_v46, 0.0 }
  0xf4   :  { %v243_v40 = vpop.f32.mrf.mxu0  ;;  %v2441_v16 = vpop.f32.mrf.mxu1 }
  0xf5   :  { %v244_v44 = vadd.f32 %v243_v40, %v2393_v29  ;;  %720 = vmatprep.mubr.bf16.mxu1 %v437_v38  ;;  %v381_v54 = vmax.f32 %v242_v43, 0.0 }
  0xf6   :  { %v245_v48 = vpop.f32.mrf.mxu0  ;;  %721 = vmatmul.mubr.bf16.gmra.mxu1 %v436_v39  ;;  %v2447_v33 = vpop.f32.mrf.mxu1 }
  0xf7   :  { %v246_v49 = vadd.f32 %v245_v48, %v2387_v27  ;;  %v382_v50 = vmax.f32 %v244_v44, 0.0 }
  0xf8   :  { %v249_v51 = vpop.f32.mrf.mxu0  ;;  %v2449_v44 = vpop.f32.mrf.mxu1 }
  0xf9   :  { %v383_v55 = vmax.f32 %v246_v49, 0.0  ;;  %v438_v60 = vpack.c.bf16 %v382_v50, %v380_v56  ;;  %v250_v2 = vadd.f32 %v249_v51, %v2393_v29 }
  0xfa   :  { %v251_v57 = vpop.f32.mrf.mxu0 }
  0xfb   :  { %v439_v59 = vpack.c.bf16 %v383_v55, %v381_v54  ;;  %v252_v63 = vadd.f32 %v251_v57, %v2387_v27  ;;  %v384_v11 = vmax.f32 %v250_v2, 0.0  ;;  %v2455_v55 = vpop.f32.mrf.mxu1 }
  0xfc   :  { %v253_v61 = vpop.f32.mrf.mxu0 }
  0xfd   :  { %v254_v1 = vadd.f32 %v253_v61, %v2393_v29  ;;  %730 = vmatprep.mubr.bf16.mxu1 %v439_v59  ;;  %v385_v9 = vmax.f32 %v252_v63, 0.0  ;;  %v292_v63 = vadd.f32 %v2395_v31, %v2387_v27 }
  0xfe   :  { %v255_v4 = vpop.f32.mrf.mxu0  ;;  %731 = vmatmul.mubr.bf16.gmra.mxu1 %v438_v60 }
  0xff   :  { %v256_v5 = vadd.f32 %v255_v4, %v2387_v27  ;;  %v386_v6 = vmax.f32 %v254_v1, 0.0  ;;  %v296_v1 = vadd.f32 %v2403_v42, %v2387_v27 }
 0x100   :  { %v259_v7 = vpop.f32.mrf.mxu0 }
 0x101   :  { %v387_v10 = vmax.f32 %v256_v5, 0.0  ;;  %v440_v15 = vpack.c.bf16 %v386_v6, %v384_v11  ;;  %v260_v19 = vadd.f32 %v259_v7, %v2393_v29  ;;  %v2461_v5 = vpop.f32.mrf.mxu1  ;;  %v401_v11 = vmax.f32 %v292_v63, 0.0 }
 0x102   :  { %v261_v12 = vpop.f32.mrf.mxu0  ;;  %v403_v31 = vmax.f32 %v296_v1, 0.0 }
 0x103   :  { %v441_v14 = vpack.c.bf16 %v387_v10, %v385_v9  ;;  %v262_v17 = vadd.f32 %v261_v12, %v2387_v27  ;;  %v388_v37 = vmax.f32 %v260_v19, 0.0 }
 0x104   :  { %v263_v0 = vpop.f32.mrf.mxu0  ;;  %v449_v19 = vpack.c.bf16 %v403_v31, %v401_v11 }
 0x105   :  { %v264_v18 = vadd.f32 %v263_v0, %v2393_v29  ;;  %740 = vmatprep.mubr.bf16.mxu1 %v441_v14  ;;  %v389_v34 = vmax.f32 %v262_v17, 0.0 }
 0x106   :  { %v265_v20 = vpop.f32.mrf.mxu0  ;;  %741 = vmatmul.mubr.bf16.gmra.mxu1 %v440_v15  ;;  %v335_v15 = vpop.f32.mrf.mxu1 }
 0x107   :  { %v266_v25 = vadd.f32 %v265_v20, %v2387_v27  ;;  %v390_v30 = vmax.f32 %v264_v18, 0.0  ;;  %v302_v20 = vadd.f32 %v2407_v53, %v2387_v27 }
 0x108   :  { %v269_v32 = vpop.f32.mrf.mxu0 }
 0x109   :  { %v391_v36 = vmax.f32 %v266_v25, 0.0  ;;  %v442_v40 = vpack.c.bf16 %v390_v30, %v388_v37  ;;  %v270_v48 = vadd.f32 %v269_v32, %v2393_v29  ;;  %v306_v25 = vadd.f32 %v2415_v3, %v2387_v27 }
 0x10a   :  { %v271_v38 = vpop.f32.mrf.mxu0  ;;  %v290_v30 = vadd.f32 %v2389_v28, %v2393_v29  ;;  %v405_v37 = vmax.f32 %v302_v20, 0.0  ;;  %v312_v3 = vadd.f32 %v2423_v26, %v2387_v27  ;;  %v316_v28 = vadd.f32 %v2431_v52, %v2387_v27 }
 0x10b   :  { %v443_v39 = vpack.c.bf16 %v391_v36, %v389_v34  ;;  %v272_v45 = vadd.f32 %v271_v38, %v2387_v27  ;;  %v392_v59 = vmax.f32 %v270_v48, 0.0  ;;  %v294_v34 = vadd.f32 %v2399_v35, %v2393_v29  ;;  %v2475_v36 = vpop.f32.mrf.mxu1 }
 0x10c   :  { %v273_v43 = vpop.f32.mrf.mxu0  ;;  %v407_v38 = vmax.f32 %v306_v25, 0.0  ;;  %v300_v35 = vadd.f32 %v2405_v47, %v2393_v29  ;;  %v322_v26 = vadd.f32 %v2439_v8, %v2387_v27  ;;  %v326_v52 = vadd.f32 %v2447_v33, %v2387_v27 }
 0x10d   :  { %v274_v46 = vadd.f32 %v273_v43, %v2393_v29  ;;  %750 = vmatprep.mubr.bf16.mxu1 %v443_v39  ;;  %v393_v56 = vmax.f32 %v272_v45, 0.0  ;;  %v400_v39 = vmax.f32 %v290_v30, 0.0  ;;  %v341_v53 = vpop.f32.mrf.mxu1  ;;  %v310_v47 = vadd.f32 %v2417_v13, %v2393_v29 }
 0x10e   :  { %v275_v49 = vpop.f32.mrf.mxu0  ;;  %751 = vmatmul.mubr.bf16.gmra.mxu1 %v442_v40  ;;  %v402_v40 = vmax.f32 %v294_v34, 0.0  ;;  %v451_v43 = vpack.c.bf16 %v407_v38, %v405_v37  ;;  %v413_v63 = vmax.f32 %v322_v26, 0.0  ;;  %v415_v1 = vmax.f32 %v326_v52, 0.0 }
 0x10f   :  { %v276_v50 = vadd.f32 %v275_v49, %v2387_v27  ;;  %v394_v51 = vmax.f32 %v274_v46, 0.0  ;;  %v304_v46 = vadd.f32 %v2411_v58, %v2393_v29  ;;  %v343_v48 = vpop.f32.mrf.mxu1  ;;  %v409_v49 = vmax.f32 %v312_v3, 0.0 }
 0x110   :  { %v279_v54 = vpop.f32.mrf.mxu0  ;;  %v448_v45 = vpack.c.bf16 %v402_v40, %v400_v39  ;;  %v314_v58 = vadd.f32 %v2425_v41, %v2393_v29  ;;  %v455_v33 = vpack.c.bf16 %v415_v1, %v413_v63  ;;  %v336_v13 = vadd.f32 %v335_v15, %v2387_v27 }
 0x111   :  { %v395_v57 = vmax.f32 %v276_v50, 0.0  ;;  %v444_v2 = vpack.c.bf16 %v394_v51, %v392_v59  ;;  %v280_v9 = vadd.f32 %v279_v54, %v2393_v29  ;;  %v411_v50 = vmax.f32 %v316_v28, 0.0 }
 0x112   :  { %v281_v60 = vpop.f32.mrf.mxu0  ;;  %v404_v51 = vmax.f32 %v300_v35, 0.0  ;;  %v406_v54 = vmax.f32 %v304_v46, 0.0  ;;  %v320_v41 = vadd.f32 %v2433_v62, %v2393_v29  ;;  %v419_v31 = vmax.f32 %v336_v13, 0.0 }
 0x113   :  { %v445_v61 = vpack.c.bf16 %v395_v57, %v393_v56  ;;  %v282_v6 = vadd.f32 %v281_v60, %v2387_v27  ;;  %v396_v17 = vmax.f32 %v280_v9, 0.0  ;;  %v345_v56 = vpop.f32.mrf.mxu1  ;;  %v453_v57 = vpack.c.bf16 %v411_v50, %v409_v49 }
 0x114   :  { %v283_v4 = vpop.f32.mrf.mxu0  ;;  %v450_v59 = vpack.c.bf16 %v406_v54, %v404_v51  ;;  %v346_v15 = vadd.f32 %v345_v56, %v2387_v27  ;;  %v330_v62 = vadd.f32 %v2449_v44, %v2393_v29  ;;  %v340_v44 = vadd.f32 %v2475_v36, %v2393_v29 }
 0x115   :  { %v284_v7 = vadd.f32 %v283_v4, %v2393_v29  ;;  %760 = vmatprep.mubr.bf16.mxu1 %v445_v61  ;;  %v397_v42 = vmax.f32 %v282_v6, 0.0  ;;  %v349_v60 = vpop.f32.mrf.mxu1  ;;  %v1917_v61 = vld [vmem:[#allocation2 + $0x40] sm:$0xff]   ;;  %v408_v4 = vmax.f32 %v310_v47, 0.0  ;;  %v410_v6 = vmax.f32 %v314_v58, 0.0 }
 0x116   :  { %v285_v10 = vpop.f32.mrf.mxu0  ;;  %761 = vmatmul.mubr.bf16.gmra.mxu1 %v444_v2  ;;  %v1918_v2 = vld [vmem:[#allocation2] sm:$0xff]   ;;  %1740 = vmatprep.subr.bf16.mxu0 %v1917_v61  ;;  %v423_v25 = vmax.f32 %v346_v15, 0.0  ;;  %v416_v30 = vmax.f32 %v330_v62, 0.0  ;;  %v420_v28 = vmax.f32 %v340_v44, 0.0  ;;  %v350_v54 = vadd.f32 %v349_v60, %v2393_v29 }
 0x117   :  { %v286_v12 = vadd.f32 %v285_v10, %v2387_v27  ;;  %v398_v14 = vmax.f32 %v284_v7, 0.0  ;;  %v351_v8 = vpop.f32.mrf.mxu1  ;;  %1741 = vmatpush3.bf16.msra.mxu0 %v1918_v2  ;;  %v332_v7 = vadd.f32 %v2455_v55, %v2387_v27  ;;  %v452_v9 = vpack.c.bf16 %v410_v6, %v408_v4  ;;  %v496_v60 = vld [vmem:[%s3152_s4] sm:$0x3] }
 0x118   :  { %v324_v10 = vadd.f32 %v2441_v16, %v2393_v29  ;;  %v342_v55 = vadd.f32 %v341_v53, %v2387_v27  ;;  %v334_v16 = vadd.f32 %v2461_v5, %v2393_v29  ;;  %v352_v38 = vadd.f32 %v351_v8, %v2387_v27 }
 0x119   :  { %v399_v0 = vmax.f32 %v286_v12, 0.0  ;;  %v446_v32 = vpack.c.bf16 %v398_v14, %v396_v17  ;;  %v353_v11 = vpop.f32.mrf.mxu1  ;;  %v417_v12 = vmax.f32 %v332_v7, 0.0  ;;  %v412_v14 = vmax.f32 %v320_v41, 0.0 }
 0x11a   :  { %v421_v20 = vmax.f32 %v342_v55, 0.0  ;;  %v344_v53 = vadd.f32 %v343_v48, %v2393_v29  ;;  %v354_v36 = vadd.f32 %v353_v11, %v2393_v29  ;;  %v2522_v2 = vrot.slane %v496_v60, %v102_v23 }
 0x11b   :  { %v447_v18 = vpack.c.bf16 %v399_v0, %v397_v42  ;;  %v414_v42 = vmax.f32 %v324_v10, 0.0  ;;  %v355_v0 = vpop.f32.mrf.mxu1  ;;  %v457_v17 = vpack.c.bf16 %v419_v31, %v417_v12  ;;  %v2526_v4 = vrot.slane %v496_v60, %v98_v24 }
 0x11c   :  { %v459_v37 = vpack.c.bf16 %v423_v25, %v421_v20  ;;  %v356_v39 = vadd.f32 %v355_v0, %v2387_v27  ;;  %v426_v26 = vmax.f32 %v354_v36, 0.0 }
 0x11d   :  { %770 = vmatprep.mubr.bf16.mxu1 %v447_v18  ;;  %v454_v18 = vpack.c.bf16 %v414_v42, %v412_v14 }
 0x11e   :  { %771 = vmatmul.mubr.bf16.gmra.mxu1 %v446_v32  ;;  %v418_v32 = vmax.f32 %v334_v16, 0.0  ;;  %v427_v3 = vmax.f32 %v356_v39, 0.0 }
 0x11f   :  { %780 = vmatprep.mubr.bf16.mxu1 %v449_v19  ;;  %v359_v19 = vpop.f32.mrf.mxu1 }
 0x120   :  { %v456_v40 = vpack.c.bf16 %v418_v32, %v416_v30  ;;  %v360_v47 = vadd.f32 %v359_v19, %v2393_v29 }
 0x121   :  { %v361_v34 = vpop.f32.mrf.mxu1 }
 0x122   :  { %v362_v49 = vadd.f32 %v361_v34, %v2387_v27 }
 0x123   :  { %v363_v5 = vpop.f32.mrf.mxu1 }
 0x124   :  { %v429_v48 = vmax.f32 %v362_v49, 0.0  ;;  %v364_v58 = vadd.f32 %v363_v5, %v2393_v29 }
 0x125   :  { %v365_v35 = vpop.f32.mrf.mxu1 }
 0x126   :  { %781 = vmatmul.mubr.bf16.gmra.mxu1 %v448_v45  ;;  %v422_v45 = vmax.f32 %v344_v53, 0.0  ;;  %v366_v50 = vadd.f32 %v365_v35, %v2387_v27  ;;  %v428_v27 = vmax.f32 %v360_v47, 0.0  ;;  %v430_v61 = vmax.f32 %v364_v58, 0.0 }
 0x127   :  { %790 = vmatprep.mubr.bf16.mxu1 %v451_v43  ;;  %v425_v43 = vmax.f32 %v352_v38, 0.0 }
 0x128   :  { %v458_v51 = vpack.c.bf16 %v422_v45, %v420_v28  ;;  %v431_v56 = vmax.f32 %v366_v50, 0.0  ;;  %v462_v63 = vpack.c.bf16 %v430_v61, %v428_v27 }
 0x129   :  { %v461_v46 = vpack.c.bf16 %v427_v3, %v425_v43 }
 0x12a   :  { %v463_v52 = vpack.c.bf16 %v431_v56, %v429_v48 }
 0x12e   :  { %791 = vmatmul.mubr.bf16.gmra.mxu1 %v450_v59 }
 0x12f   :  { %800 = vmatprep.mubr.bf16.mxu1 %v453_v57  ;;  %v424_v57 = vmax.f32 %v350_v54, 0.0 }
 0x131   :  { %v460_v59 = vpack.c.bf16 %v426_v26, %v424_v57 }
 0x136   :  { %801 = vmatmul.mubr.bf16.gmra.mxu1 %v452_v9 }
 0x137   :  { %810 = vmatprep.mubr.bf16.mxu1 %v455_v33 }
 0x13e   :  { %811 = vmatmul.mubr.bf16.gmra.mxu1 %v454_v18 }
 0x13f   :  { %820 = vmatprep.mubr.bf16.mxu1 %v457_v17 }
 0x146   :  { %821 = vmatmul.mubr.bf16.gmra.mxu1 %v456_v40 }
 0x147   :  { %830 = vmatprep.mubr.bf16.mxu1 %v459_v37 }
 0x14e   :  { %831 = vmatmul.mubr.bf16.gmra.mxu1 %v458_v51 }
 0x14f   :  { %840 = vmatprep.mubr.bf16.mxu1 %v461_v46 }
 0x156   :  { %841 = vmatmul.mubr.bf16.gmra.mxu1 %v460_v59 }
 0x157   :  { %850 = vmatprep.mubr.bf16.mxu1 %v463_v52 }
 0x15e   :  { %851 = vmatmul.mubr.bf16.gmra.mxu1 %v462_v63 }
 0x1a6   :  { %v702_v1 = vpop.f32.mrf.mxu1 }
 0x1a7   :  { %v703_v7 = vadd.f32 %v702_v1, %v2526_v4 }
 0x1a8   :  { %v704_v29 = vpop.f32.mrf.mxu1 }
 0x1a9   :  { %v705_v8 = vadd.f32 %v704_v29, %v2522_v2  ;;  %v861_v12 = vmax.f32 %v703_v7, 0.0 }
 0x1aa   :  { %v706_v6 = vpop.f32.mrf.mxu1 }
 0x1ab   :  { %v707_v33 = vadd.f32 %v706_v6, %v2526_v4  ;;  %v862_v11 = vmax.f32 %v705_v8, 0.0 }
 0x1ac   :  { %v708_v13 = vpop.f32.mrf.mxu1 }
 0x1ad   :  { %v709_v9 = vadd.f32 %v708_v13, %v2522_v2  ;;  %v863_v41 = vmax.f32 %v707_v33, 0.0 }
 0x1ae   :  { %v712_v10 = vpop.f32.mrf.mxu1 }
 0x1af   :  { %v864_v23 = vmax.f32 %v709_v9, 0.0  ;;  %v925_v24 = vpack.c.bf16 %v863_v41, %v861_v12  ;;  %v713_v17 = vadd.f32 %v712_v10, %v2526_v4 }
 0x1b0   :  { %v714_v31 = vpop.f32.mrf.mxu1 }
 0x1b1   :  { %v926_v22 = vpack.c.bf16 %v864_v23, %v862_v11  ;;  %v715_v42 = vadd.f32 %v714_v31, %v2522_v2  ;;  %v865_v20 = vmax.f32 %v713_v17, 0.0 }
 0x1b2   :  { %v716_v14 = vpop.f32.mrf.mxu1 }
 0x1b3   :  { %v717_v0 = vadd.f32 %v716_v14, %v2526_v4  ;;  %1124 = vmatprep.mubr.bf16.mxu0 %v926_v22  ;;  %v866_v16 = vmax.f32 %v715_v42, 0.0 }
 0x1b4   :  { %v718_v55 = vpop.f32.mrf.mxu1  ;;  %1125 = vmatmul.mubr.bf16.vlgmr.msra.gmra.mxu0 %v925_v24 }
 0x1b5   :  { %v719_v15 = vadd.f32 %v718_v55, %v2522_v2  ;;  %v867_v18 = vmax.f32 %v717_v0, 0.0 }
 0x1b6   :  { %v722_v62 = vpop.f32.mrf.mxu1 }
 0x1b7   :  { %v868_v19 = vmax.f32 %v719_v15, 0.0  ;;  %v927_v32 = vpack.c.bf16 %v867_v18, %v865_v20  ;;  %v723_v39 = vadd.f32 %v722_v62, %v2526_v4 }
 0x1b8   :  { %v724_v25 = vpop.f32.mrf.mxu1 }
 0x1b9   :  { %v928_v30 = vpack.c.bf16 %v868_v19, %v866_v16  ;;  %v725_v37 = vadd.f32 %v724_v25, %v2522_v2  ;;  %v869_v28 = vmax.f32 %v723_v39, 0.0 }
 0x1ba   :  { %v726_v34 = vpop.f32.mrf.mxu1 }
 0x1bb   :  { %v727_v38 = vadd.f32 %v726_v34, %v2526_v4  ;;  %1132 = vmatprep.mubr.bf16.mxu0 %v928_v30  ;;  %v870_v43 = vmax.f32 %v725_v37, 0.0 }
 0x1bc   :  { %v728_v40 = vpop.f32.mrf.mxu1  ;;  %1133 = vmatmul.mubr.bf16.gmra.mxu0 %v927_v32 }
 0x1bd   :  { %v729_v44 = vadd.f32 %v728_v40, %v2522_v2  ;;  %v871_v53 = vmax.f32 %v727_v38, 0.0 }
 0x1be   :  { %v732_v5 = vpop.f32.mrf.mxu1 }
 0x1bf   :  { %v872_v3 = vmax.f32 %v729_v44, 0.0  ;;  %v929_v46 = vpack.c.bf16 %v871_v53, %v869_v28  ;;  %v733_v54 = vadd.f32 %v732_v5, %v2526_v4 }
 0x1c0   :  { %v734_v45 = vpop.f32.mrf.mxu1 }
 0x1c1   :  { %v930_v35 = vpack.c.bf16 %v872_v3, %v870_v43  ;;  %v735_v50 = vadd.f32 %v734_v45, %v2522_v2  ;;  %v873_v59 = vmax.f32 %v733_v54, 0.0 }
 0x1c2   :  { %v736_v49 = vpop.f32.mrf.mxu1 }
 0x1c3   :  { %v737_v51 = vadd.f32 %v736_v49, %v2526_v4  ;;  %1140 = vmatprep.mubr.bf16.mxu0 %v930_v35  ;;  %v874_v26 = vmax.f32 %v735_v50, 0.0 }
 0x1c4   :  { %v738_v36 = vpop.f32.mrf.mxu1  ;;  %1141 = vmatmul.mubr.bf16.gmra.mxu0 %v929_v46 }
 0x1c5   :  { %v739_v48 = vadd.f32 %v738_v36, %v2522_v2  ;;  %v875_v56 = vmax.f32 %v737_v51, 0.0 }
 0x1c6   :  { %v742_v57 = vpop.f32.mrf.mxu1 }
 0x1c7   :  { %v876_v52 = vmax.f32 %v739_v48, 0.0  ;;  %v931_v27 = vpack.c.bf16 %v875_v56, %v873_v59  ;;  %v743_v1 = vadd.f32 %v742_v57, %v2526_v4 }
 0x1c8   :  { %v744_v47 = vpop.f32.mrf.mxu1 }
 0x1c9   :  { %v932_v58 = vpack.c.bf16 %v876_v52, %v874_v26  ;;  %v745_v63 = vadd.f32 %v744_v47, %v2522_v2  ;;  %v877_v9 = vmax.f32 %v743_v1, 0.0 }
 0x1ca   :  { %v746_v61 = vpop.f32.mrf.mxu1 }
 0x1cb   :  { %v747_v60 = vadd.f32 %v746_v61, %v2526_v4  ;;  %1148 = vmatprep.mubr.bf16.mxu0 %v932_v58  ;;  %v878_v7 = vmax.f32 %v745_v63, 0.0 }
 0x1cc   :  { %v748_v29 = vpop.f32.mrf.mxu1  ;;  %1149 = vmatmul.mubr.bf16.gmra.mxu0 %v931_v27 }
 0x1cd   :  { %v749_v6 = vadd.f32 %v748_v29, %v2522_v2  ;;  %v879_v8 = vmax.f32 %v747_v60, 0.0 }
 0x1ce   :  { %v752_v33 = vpop.f32.mrf.mxu1 }
 0x1cf   :  { %v880_v13 = vmax.f32 %v749_v6, 0.0  ;;  %v933_v11 = vpack.c.bf16 %v879_v8, %v877_v9  ;;  %v753_v22 = vadd.f32 %v752_v33, %v2526_v4 }
 0x1d0   :  { %v754_v41 = vpop.f32.mrf.mxu1 }
 0x1d1   :  { %v934_v10 = vpack.c.bf16 %v880_v13, %v878_v7  ;;  %v755_v12 = vadd.f32 %v754_v41, %v2522_v2  ;;  %v881_v15 = vmax.f32 %v753_v22, 0.0 }
 0x1d2   :  { %v756_v23 = vpop.f32.mrf.mxu1 }
 0x1d3   :  { %v757_v31 = vadd.f32 %v756_v23, %v2526_v4  ;;  %1156 = vmatprep.mubr.bf16.mxu0 %v934_v10  ;;  %v882_v17 = vmax.f32 %v755_v12, 0.0 }
 0x1d4   :  { %v758_v24 = vpop.f32.mrf.mxu1  ;;  %1157 = vmatmul.mubr.bf16.gmra.mxu0 %v933_v11 }
 0x1d5   :  { %v759_v14 = vadd.f32 %v758_v24, %v2522_v2  ;;  %v883_v42 = vmax.f32 %v757_v31, 0.0 }
 0x1d6   :  { %v762_v0 = vpop.f32.mrf.mxu1 }
 0x1d7   :  { %v884_v55 = vmax.f32 %v759_v14, 0.0  ;;  %v935_v16 = vpack.c.bf16 %v883_v42, %v881_v15  ;;  %v763_v30 = vadd.f32 %v762_v0, %v2526_v4 }
 0x1d8   :  { %v764_v18 = vpop.f32.mrf.mxu1 }
 0x1d9   :  { %v936_v62 = vpack.c.bf16 %v884_v55, %v882_v17  ;;  %v765_v20 = vadd.f32 %v764_v18, %v2522_v2  ;;  %v885_v44 = vmax.f32 %v763_v30, 0.0 }
 0x1da   :  { %v766_v19 = vpop.f32.mrf.mxu1 }
 0x1db   :  { %v767_v25 = vadd.f32 %v766_v19, %v2526_v4  ;;  %1164 = vmatprep.mubr.bf16.mxu0 %v936_v62  ;;  %v886_v39 = vmax.f32 %v765_v20, 0.0 }
 0x1dc   :  { %v768_v32 = vpop.f32.mrf.mxu1  ;;  %1165 = vmatmul.mubr.bf16.gmra.mxu0 %v935_v16 }
 0x1dd   :  { %v769_v34 = vadd.f32 %v768_v32, %v2522_v2  ;;  %v887_v37 = vmax.f32 %v767_v25, 0.0 }
 0x1de   :  { %v772_v38 = vpop.f32.mrf.mxu1 }
 0x1df   :  { %v888_v40 = vmax.f32 %v769_v34, 0.0  ;;  %v937_v43 = vpack.c.bf16 %v887_v37, %v885_v44  ;;  %v773_v35 = vadd.f32 %v772_v38, %v2526_v4 }
 0x1e0   :  { %v774_v53 = vpop.f32.mrf.mxu1 }
 0x1e1   :  { %v938_v5 = vpack.c.bf16 %v888_v40, %v886_v39  ;;  %v775_v28 = vadd.f32 %v774_v53, %v2522_v2  ;;  %v889_v48 = vmax.f32 %v773_v35, 0.0 }
 0x1e2   :  { %v776_v3 = vpop.f32.mrf.mxu1 }
 0x1e3   :  { %v777_v45 = vadd.f32 %v776_v3, %v2526_v4  ;;  %1172 = vmatprep.mubr.bf16.mxu0 %v938_v5  ;;  %v890_v54 = vmax.f32 %v775_v28, 0.0 }
 0x1e4   :  { %v778_v46 = vpop.f32.mrf.mxu1  ;;  %1173 = vmatmul.mubr.bf16.gmra.mxu0 %v937_v43 }
 0x1e5   :  { %v779_v49 = vadd.f32 %v778_v46, %v2522_v2  ;;  %v891_v50 = vmax.f32 %v777_v45, 0.0 }
 0x1e6   :  { %v782_v51 = vpop.f32.mrf.mxu1 }
 0x1e7   :  { %v892_v36 = vmax.f32 %v779_v49, 0.0  ;;  %v939_v26 = vpack.c.bf16 %v891_v50, %v889_v48  ;;  %v783_v58 = vadd.f32 %v782_v51, %v2526_v4 }
 0x1e8   :  { %v784_v56 = vpop.f32.mrf.mxu1 }
 0x1e9   :  { %v940_v57 = vpack.c.bf16 %v892_v36, %v890_v54  ;;  %v785_v59 = vadd.f32 %v784_v56, %v2522_v2  ;;  %v893_v6 = vmax.f32 %v783_v58, 0.0 }
 0x1ea   :  { %v786_v52 = vpop.f32.mrf.mxu1 }
 0x1eb   :  { %v787_v47 = vadd.f32 %v786_v52, %v2526_v4  ;;  %1180 = vmatprep.mubr.bf16.mxu0 %v940_v57  ;;  %v894_v1 = vmax.f32 %v785_v59, 0.0 }
 0x1ec   :  { %v788_v27 = vpop.f32.mrf.mxu1  ;;  %1181 = vmatmul.mubr.bf16.gmra.mxu0 %v939_v26 }
 0x1ed   :  { %v789_v61 = vadd.f32 %v788_v27, %v2522_v2  ;;  %v895_v63 = vmax.f32 %v787_v47, 0.0 }
 0x1ee   :  { %v792_v60 = vpop.f32.mrf.mxu1 }
 0x1ef   :  { %v896_v29 = vmax.f32 %v789_v61, 0.0  ;;  %v941_v7 = vpack.c.bf16 %v895_v63, %v893_v6  ;;  %v793_v10 = vadd.f32 %v792_v60, %v2526_v4 }
 0x1f0   :  { %v794_v8 = vpop.f32.mrf.mxu1 }
 0x1f1   :  { %v942_v33 = vpack.c.bf16 %v896_v29, %v894_v1  ;;  %v795_v9 = vadd.f32 %v794_v8, %v2522_v2  ;;  %v897_v14 = vmax.f32 %v793_v10, 0.0 }
 0x1f2   :  { %v796_v13 = vpop.f32.mrf.mxu1 }
 0x1f3   :  { %v797_v41 = vadd.f32 %v796_v13, %v2526_v4  ;;  %1188 = vmatprep.mubr.bf16.mxu0 %v942_v33  ;;  %v898_v22 = vmax.f32 %v795_v9, 0.0 }
 0x1f4   :  { %v798_v11 = vpop.f32.mrf.mxu1  ;;  %1189 = vmatmul.mubr.bf16.gmra.mxu0 %v941_v7 }
 0x1f5   :  { %v799_v23 = vadd.f32 %v798_v11, %v2522_v2  ;;  %v899_v12 = vmax.f32 %v797_v41, 0.0 }
 0x1f6   :  { %v802_v31 = vpop.f32.mrf.mxu1 }
 0x1f7   :  { %v900_v24 = vmax.f32 %v799_v23, 0.0  ;;  %v943_v17 = vpack.c.bf16 %v899_v12, %v897_v14  ;;  %v803_v62 = vadd.f32 %v802_v31, %v2526_v4 }
 0x1f8   :  { %v804_v42 = vpop.f32.mrf.mxu1 }
 0x1f9   :  { %v944_v0 = vpack.c.bf16 %v900_v24, %v898_v22  ;;  %v805_v15 = vadd.f32 %v804_v42, %v2522_v2  ;;  %v901_v34 = vmax.f32 %v803_v62, 0.0 }
 0x1fa   :  { %v806_v55 = vpop.f32.mrf.mxu1 }
 0x1fb   :  { %v807_v18 = vadd.f32 %v806_v55, %v2526_v4  ;;  %1196 = vmatprep.mubr.bf16.mxu0 %v944_v0  ;;  %v902_v30 = vmax.f32 %v805_v15, 0.0 }
 0x1fc   :  { %v808_v16 = vpop.f32.mrf.mxu1  ;;  %1197 = vmatmul.mubr.bf16.gmra.mxu0 %v943_v17 }
 0x1fd   :  { %v809_v19 = vadd.f32 %v808_v16, %v2522_v2  ;;  %v903_v20 = vmax.f32 %v807_v18, 0.0 }
 0x1fe   :  { %v812_v25 = vpop.f32.mrf.mxu1 }
 0x1ff   :  { %v904_v32 = vmax.f32 %v809_v19, 0.0  ;;  %v945_v39 = vpack.c.bf16 %v903_v20, %v901_v34  ;;  %v813_v5 = vadd.f32 %v812_v25, %v2526_v4 }
 0x200   :  { %v814_v37 = vpop.f32.mrf.mxu1 }
 0x201   :  { %v946_v38 = vpack.c.bf16 %v904_v32, %v902_v30  ;;  %v815_v44 = vadd.f32 %v814_v37, %v2522_v2  ;;  %v905_v49 = vmax.f32 %v813_v5, 0.0 }
 0x202   :  { %v816_v40 = vpop.f32.mrf.mxu1 }
 0x203   :  { %v817_v53 = vadd.f32 %v816_v40, %v2526_v4  ;;  %1204 = vmatprep.mubr.bf16.mxu0 %v946_v38  ;;  %v906_v35 = vmax.f32 %v815_v44, 0.0 }
 0x204   :  { %v818_v43 = vpop.f32.mrf.mxu1  ;;  %1205 = vmatmul.mubr.bf16.gmra.mxu0 %v945_v39 }
 0x205   :  { %v819_v3 = vadd.f32 %v818_v43, %v2522_v2  ;;  %v907_v28 = vmax.f32 %v817_v53, 0.0 }
 0x206   :  { %v822_v45 = vpop.f32.mrf.mxu1 }
 0x207   :  { %v908_v46 = vmax.f32 %v819_v3, 0.0  ;;  %v947_v54 = vpack.c.bf16 %v907_v28, %v905_v49  ;;  %v823_v57 = vadd.f32 %v822_v45, %v2526_v4  ;;  %v2593_v45 = vand.u32 127, %v96_v21 }
 0x208   :  { %v824_v50 = vpop.f32.mrf.mxu1 }
 0x209   :  { %v948_v51 = vpack.c.bf16 %v908_v46, %v906_v35  ;;  %v825_v48 = vadd.f32 %v824_v50, %v2522_v2  ;;  %v909_v61 = vmax.f32 %v823_v57, 0.0  ;;  %vm1255_vm1 = vcmp.lt.s32.totalorder %v2593_v45, 8 }
 0x20a   :  { %v826_v36 = vpop.f32.mrf.mxu1 }
 0x20b   :  { %v827_v56 = vadd.f32 %v826_v36, %v2526_v4  ;;  %1212 = vmatprep.mubr.bf16.mxu0 %v948_v51  ;;  %v910_v58 = vmax.f32 %v825_v48, 0.0 }
 0x20c   :  { %v828_v26 = vpop.f32.mrf.mxu1  ;;  %1213 = vmatmul.mubr.bf16.gmra.mxu0 %v947_v54 }
 0x20d   :  { %v829_v52 = vadd.f32 %v828_v26, %v2522_v2  ;;  %v911_v59 = vmax.f32 %v827_v56, 0.0 }
 0x20e   :  { %v832_v47 = vpop.f32.mrf.mxu1 }
 0x20f   :  { %v912_v27 = vmax.f32 %v829_v52, 0.0  ;;  %v949_v1 = vpack.c.bf16 %v911_v59, %v909_v61  ;;  %v833_v33 = vadd.f32 %v832_v47, %v2526_v4 }
 0x210   :  { %v834_v63 = vpop.f32.mrf.mxu1 }
 0x211   :  { %v950_v60 = vpack.c.bf16 %v912_v27, %v910_v58  ;;  %v835_v6 = vadd.f32 %v834_v63, %v2522_v2  ;;  %v913_v23 = vmax.f32 %v833_v33, 0.0 }
 0x212   :  { %v836_v29 = vpop.f32.mrf.mxu1 }
 0x213   :  { %v837_v8 = vadd.f32 %v836_v29, %v2526_v4  ;;  %1220 = vmatprep.mubr.bf16.mxu0 %v950_v60  ;;  %v914_v10 = vmax.f32 %v835_v6, 0.0 }
 0x214   :  { %v838_v7 = vpop.f32.mrf.mxu1  ;;  %1221 = vmatmul.mubr.bf16.gmra.mxu0 %v949_v1 }
 0x215   :  { %v839_v13 = vadd.f32 %v838_v7, %v2522_v2  ;;  %v915_v9 = vmax.f32 %v837_v8, 0.0 }
 0x216   :  { %v842_v41 = vpop.f32.mrf.mxu1 }
 0x217   :  { %v916_v11 = vmax.f32 %v839_v13, 0.0  ;;  %v951_v22 = vpack.c.bf16 %v915_v9, %v913_v23  ;;  %v843_v0 = vadd.f32 %v842_v41, %v2526_v4 }
 0x218   :  { %v844_v12 = vpop.f32.mrf.mxu1 }
 0x219   :  { %v952_v31 = vpack.c.bf16 %v916_v11, %v914_v10  ;;  %v845_v14 = vadd.f32 %v844_v12, %v2522_v2  ;;  %v917_v19 = vmax.f32 %v843_v0, 0.0 }
 0x21a   :  { %v846_v24 = vpop.f32.mrf.mxu1 }
 0x21b   :  { %v847_v42 = vadd.f32 %v846_v24, %v2526_v4  ;;  %1228 = vmatprep.mubr.bf16.mxu0 %v952_v31  ;;  %v918_v62 = vmax.f32 %v845_v14, 0.0 }
 0x21c   :  { %v848_v17 = vpop.f32.mrf.mxu1  ;;  %1229 = vmatmul.mubr.bf16.gmra.mxu0 %v951_v22 }
 0x21d   :  { %v849_v55 = vadd.f32 %v848_v17, %v2522_v2  ;;  %v919_v15 = vmax.f32 %v847_v42, 0.0 }
 0x21e   :  { %v852_v18 = vpop.f32.mrf.mxu1 }
 0x21f   :  { %v920_v16 = vmax.f32 %v849_v55, 0.0  ;;  %v953_v30 = vpack.c.bf16 %v919_v15, %v917_v19  ;;  %v853_v38 = vadd.f32 %v852_v18, %v2526_v4 }
 0x220   :  { %v854_v20 = vpop.f32.mrf.mxu1 }
 0x221   :  { %v954_v25 = vpack.c.bf16 %v920_v16, %v918_v62  ;;  %v855_v34 = vadd.f32 %v854_v20, %v2522_v2  ;;  %v921_v43 = vmax.f32 %v853_v38, 0.0 }
 0x222   :  { %v856_v32 = vpop.f32.mrf.mxu1 }
 0x223   :  { %v857_v37 = vadd.f32 %v856_v32, %v2526_v4  ;;  %1236 = vmatprep.mubr.bf16.mxu0 %v954_v25  ;;  %v922_v53 = vmax.f32 %v855_v34, 0.0  ;;  %v2598_v4 = vld [vmem:[%s3154_s6] ss:$0 sm:$0xff]  ;;  %s2095_s6 = smov [#allocation5]  }
 0x224   :  { %v858_v39 = vpop.f32.mrf.mxu1  ;;  %1237 = vmatmul.mubr.bf16.gmra.mxu0 %v953_v30  ;;  %s1645_s20 = sshll.u32 %s2095_s6, 4  ;;  %s1646_s20 = int_to_ptr.vmem [resolvable:$true] %s1645_s20 }
 0x225   :  { %v859_v40 = vadd.f32 %v858_v39, %v2522_v2  ;;  %v923_v44 = vmax.f32 %v857_v37, 0.0  ;;  %s2067_s1 = scalar_lea.vmem %s1646_s20, 4096  ;;  %p2072_p6 = scmp.lt.s32.totalorder %s1646_s20, %s1646_s20 }
 0x226   :  { %p2068_p5 = scmp.ne.s32.totalorder %s1646_s20, %s2067_s1  ;;  %p2073_p7 = scmp.lt.s32.totalorder %s2067_s1, %s2067_s1 }
 0x227   :  { %v924_v5 = vmax.f32 %v859_v40, 0.0  ;;  %v955_v28 = vpack.c.bf16 %v923_v44, %v921_v43 }
 0x228   :  { %p2074_p8 = por %p2073_p7, %p2072_p6 }
 0x229   :  { %v956_v3 = vpack.c.bf16 %v924_v5, %v922_v53 }
 0x22a   :  { %p2075_p9 = pnand %p2074_p8, %p2068_p5 }
 0x22b   :  { %1244 = vmatprep.mubr.bf16.mxu0 %v956_v3 }
 0x22c   :  { %1245 = vmatmul.mubr.bf16.gmra.mxu0 %v955_v28 }
 0x274   :  { %v1742_v35 = vpop.f32.mrf.mxu0 }
 0x276   :  { %v1743_v46 = vpop.f32.mrf.mxu0 }
 0x277   :  { %v1744_v49 = vadd.f32 %v1743_v46, %v1742_v35 }
 0x278   :  { %v1745_v2 = vpop.f32.mrf.mxu0 }
 0x279   :  { %v2602_v50 = vadd.f32 %v1744_v49, %v2598_v4 }
 0x27a   :  { %v1746_v51 = vpop.f32.mrf.mxu0 }
 0x27b   :  { %v1747_v54 = vadd.f32 %v1746_v51, %v1745_v2  ;;  %v2607_v21 = vsel %vm1255_vm1, %v2602_v50, -inf }
 0x27c   :  { %v1748_v36 = vpop.f32.mrf.mxu0  ;;  %1288 = vmax.xlane.f32.xlu0 %v2607_v21 }
 0x27d   :  { %v2611_v48 = vadd.f32 %v1747_v54, %v2598_v4 }
 0x27e   :  { %v1749_v56 = vpop.f32.mrf.mxu0 }
 0x27f   :  { %v1750_v57 = vadd.f32 %v1749_v56, %v1748_v36  ;;  %v2616_v26 = vsel %vm1255_vm1, %v2611_v48, -inf }
 0x280   :  { %v1751_v52 = vpop.f32.mrf.mxu0  ;;  %1290 = vmax.xlane.f32.xlu0 %v2616_v26 }
 0x281   :  { %v2620_v59 = vadd.f32 %v1750_v57, %v2598_v4 }
 0x282   :  { %v1752_v47 = vpop.f32.mrf.mxu0 }
 0x283   :  { %v1753_v58 = vadd.f32 %v1752_v47, %v1751_v52  ;;  %v2625_v27 = vsel %vm1255_vm1, %v2620_v59, -inf }
 0x284   :  { %v1754_v61 = vpop.f32.mrf.mxu0  ;;  %1292 = vmax.xlane.f32.xlu1 %v2625_v27 }
 0x285   :  { %v2629_v63 = vadd.f32 %v1753_v58, %v2598_v4 }
 0x286   :  { %v1755_v60 = vpop.f32.mrf.mxu0 }
 0x287   :  { %v1756_v1 = vadd.f32 %v1755_v60, %v1754_v61  ;;  %v2634_v29 = vsel %vm1255_vm1, %v2629_v63, -inf }
 0x288   :  { %v1757_v6 = vpop.f32.mrf.mxu0  ;;  %1294 = vmax.xlane.f32.xlu1 %v2634_v29 }
 0x289   :  { %v2638_v8 = vadd.f32 %v1756_v1, %v2598_v4 }
 0x28a   :  { %v1758_v33 = vpop.f32.mrf.mxu0 }
 0x28b   :  { %v1759_v7 = vadd.f32 %v1758_v33, %v1757_v6  ;;  %v2643_v13 = vsel %vm1255_vm1, %v2638_v8, -inf }
 0x28c   :  { %v1760_v9 = vpop.f32.mrf.mxu0  ;;  %1296 = vmax.xlane.f32.xlu0 %v2643_v13 }
 0x28d   :  { %v2647_v41 = vadd.f32 %v1759_v7, %v2598_v4 }
 0x28e   :  { %v1761_v10 = vpop.f32.mrf.mxu0 }
 0x28f   :  { %v1762_v11 = vadd.f32 %v1761_v10, %v1760_v9  ;;  %v2652_v23 = vsel %vm1255_vm1, %v2647_v41, -inf }
 0x290   :  { %v1763_v12 = vpop.f32.mrf.mxu0  ;;  %1298 = vmax.xlane.f32.xlu1 %v2652_v23 }
 0x291   :  { %v2656_v31 = vadd.f32 %v1762_v11, %v2598_v4 }
 0x292   :  { %v1764_v22 = vpop.f32.mrf.mxu0 }
 0x293   :  { %v1765_v24 = vadd.f32 %v1764_v22, %v1763_v12  ;;  %v2661_v14 = vsel %vm1255_vm1, %v2656_v31, -inf }
 0x294   :  { %v1766_v42 = vpop.f32.mrf.mxu0  ;;  %1300 = vmax.xlane.f32.xlu0 %v2661_v14 }
 0x295   :  { %v2665_v0 = vadd.f32 %v1765_v24, %v2598_v4 }
 0x296   :  { %v1767_v17 = vpop.f32.mrf.mxu0 }
 0x297   :  { %v1768_v55 = vadd.f32 %v1767_v17, %v1766_v42  ;;  %v2670_v15 = vsel %vm1255_vm1, %v2665_v0, -inf }
 0x298   :  { %v1769_v18 = vpop.f32.mrf.mxu0  ;;  %1302 = vmax.xlane.f32.xlu1 %v2670_v15 }
 0x299   :  { %v2674_v62 = vadd.f32 %v1768_v55, %v2598_v4 }
 0x29a   :  { %v1770_v16 = vpop.f32.mrf.mxu0 }
 0x29b   :  { %v1771_v19 = vadd.f32 %v1770_v16, %v1769_v18  ;;  %v2679_v20 = vsel %vm1255_vm1, %v2674_v62, -inf }
 0x29c   :  { %v1772_v25 = vpop.f32.mrf.mxu0  ;;  %1304 = vmax.xlane.f32.xlu0 %v2679_v20 }
 0x29d   :  { %v2683_v30 = vadd.f32 %v1771_v19, %v2598_v4 }
 0x29e   :  { %v1773_v32 = vpop.f32.mrf.mxu0 }
 0x29f   :  { %v1774_v34 = vadd.f32 %v1773_v32, %v1772_v25  ;;  %v2688_v37 = vsel %vm1255_vm1, %v2683_v30, -inf }
 0x2a0   :  { %v1775_v38 = vpop.f32.mrf.mxu0  ;;  %1306 = vmax.xlane.f32.xlu1 %v2688_v37 }
 0x2a1   :  { %v2692_v39 = vadd.f32 %v1774_v34, %v2598_v4 }
 0x2a2   :  { %v1776_v40 = vpop.f32.mrf.mxu0 }
 0x2a3   :  { %v1777_v44 = vadd.f32 %v1776_v40, %v1775_v38  ;;  %v2697_v53 = vsel %vm1255_vm1, %v2692_v39, -inf }
 0x2a4   :  { %v1778_v5 = vpop.f32.mrf.mxu0  ;;  %1308 = vmax.xlane.f32.xlu0 %v2697_v53 }
 0x2a5   :  { %v2701_v43 = vadd.f32 %v1777_v44, %v2598_v4 }
 0x2a6   :  { %v1779_v3 = vpop.f32.mrf.mxu0 }
 0x2a7   :  { %v1780_v28 = vadd.f32 %v1779_v3, %v1778_v5  ;;  %v2706_v35 = vsel %vm1255_vm1, %v2701_v43, -inf }
 0x2a8   :  { %v1781_v46 = vpop.f32.mrf.mxu0  ;;  %1310 = vmax.xlane.f32.xlu1 %v2706_v35 }
 0x2a9   :  { %v2710_v49 = vadd.f32 %v1780_v28, %v2598_v4 }
 0x2aa   :  { %v1782_v2 = vpop.f32.mrf.mxu0 }
 0x2ab   :  { %v1783_v51 = vadd.f32 %v1782_v2, %v1781_v46  ;;  %v2715_v54 = vsel %vm1255_vm1, %v2710_v49, -inf }
 0x2ac   :  { %v1784_v36 = vpop.f32.mrf.mxu0  ;;  %1312 = vmax.xlane.f32.xlu0 %v2715_v54 }
 0x2ad   :  { %v2719_v56 = vadd.f32 %v1783_v51, %v2598_v4 }
 0x2ae   :  { %v1785_v57 = vpop.f32.mrf.mxu0 }
 0x2af   :  { %v1786_v52 = vadd.f32 %v1785_v57, %v1784_v36  ;;  %v2724_v47 = vsel %vm1255_vm1, %v2719_v56, -inf }
 0x2b0   :  { %v1787_v58 = vpop.f32.mrf.mxu0  ;;  %1314 = vmax.xlane.f32.xlu1 %v2724_v47 }
 0x2b1   :  { %v2728_v61 = vadd.f32 %v1786_v52, %v2598_v4 }
 0x2b2   :  { %v1788_v60 = vpop.f32.mrf.mxu0 }
 0x2b3   :  { %v1789_v1 = vadd.f32 %v1788_v60, %v1787_v58  ;;  %v2733_v6 = vsel %vm1255_vm1, %v2728_v61, -inf }
 0x2b4   :  { %v1790_v33 = vpop.f32.mrf.mxu0  ;;  %1316 = vmax.xlane.f32.xlu0 %v2733_v6 }
 0x2b5   :  { %v2737_v7 = vadd.f32 %v1789_v1, %v2598_v4 }
 0x2b6   :  { %v1791_v9 = vpop.f32.mrf.mxu0 }
 0x2b7   :  { %v1792_v10 = vadd.f32 %v1791_v9, %v1790_v33  ;;  %v2742_v11 = vsel %vm1255_vm1, %v2737_v7, -inf }
 0x2b8   :  { %v1793_v12 = vpop.f32.mrf.mxu0  ;;  %1318 = vmax.xlane.f32.xlu1 %v2742_v11 }
 0x2b9   :  { %v2746_v22 = vadd.f32 %v1792_v10, %v2598_v4 }
 0x2ba   :  { %v1794_v24 = vpop.f32.mrf.mxu0 }
 0x2bb   :  { %v1795_v42 = vadd.f32 %v1794_v24, %v1793_v12  ;;  %v2751_v17 = vsel %vm1255_vm1, %v2746_v22, -inf }
 0x2bc   :  { %v1796_v55 = vpop.f32.mrf.mxu0  ;;  %1320 = vmax.xlane.f32.xlu0 %v2751_v17 }
 0x2bd   :  { %v2755_v18 = vadd.f32 %v1795_v42, %v2598_v4 }
 0x2be   :  { %v1797_v16 = vpop.f32.mrf.mxu0 }
 0x2bf   :  { %v1798_v19 = vadd.f32 %v1797_v16, %v1796_v55  ;;  %v2760_v25 = vsel %vm1255_vm1, %v2755_v18, -inf }
 0x2c0   :  { %v1799_v32 = vpop.f32.mrf.mxu0  ;;  %1322 = vmax.xlane.f32.xlu1 %v2760_v25 }
 0x2c1   :  { %v2764_v34 = vadd.f32 %v1798_v19, %v2598_v4 }
 0x2c2   :  { %v1800_v38 = vpop.f32.mrf.mxu0 }
 0x2c3   :  { %3170 = vst [vmem:[#allocation8_spill] sm:$0xff] %v2764_v34  ;;  %v1801_v40 = vadd.f32 %v1800_v38, %v1799_v32  ;;  %v2769_v44 = vsel %vm1255_vm1, %v2764_v34, -inf }
 0x2c4   :  { %v1802_v5 = vpop.f32.mrf.mxu0  ;;  %1324 = vmax.xlane.f32.xlu0 %v2769_v44 }
 0x2c5   :  { %v2773_v3 = vadd.f32 %v1801_v40, %v2598_v4 }
 0x2c6   :  { %v1803_v28 = vpop.f32.mrf.mxu0 }
 0x2c7   :  { %3171 = vst [vmem:[#allocation9_spill] sm:$0xff] %v2773_v3  ;;  %v1804_v46 = vadd.f32 %v1803_v28, %v1802_v5  ;;  %v2778_v2 = vsel %vm1255_vm1, %v2773_v3, -inf }
 0x2c8   :  { %v1805_v51 = vpop.f32.mrf.mxu0  ;;  %1326 = vmax.xlane.f32.xlu1 %v2778_v2 }
 0x2c9   :  { %v2782_v36 = vadd.f32 %v1804_v46, %v2598_v4 }
 0x2ca   :  { %v1806_v57 = vpop.f32.mrf.mxu0 }
 0x2cb   :  { %3172 = vst [vmem:[#allocation10_spill] sm:$0xff] %v2782_v36  ;;  %v1807_v52 = vadd.f32 %v1806_v57, %v1805_v51  ;;  %v2787_v58 = vsel %vm1255_vm1, %v2782_v36, -inf }
 0x2cc   :  { %v1808_v60 = vpop.f32.mrf.mxu0  ;;  %1328 = vmax.xlane.f32.xlu0 %v2787_v58 }
 0x2cd   :  { %v2791_v1 = vadd.f32 %v1807_v52, %v2598_v4 }
 0x2ce   :  { %v1809_v33 = vpop.f32.mrf.mxu0 }
 0x2cf   :  { %3173 = vst [vmem:[#allocation11_spill] sm:$0xff] %v2791_v1  ;;  %v1810_v9 = vadd.f32 %v1809_v33, %v1808_v60  ;;  %v2796_v10 = vsel %vm1255_vm1, %v2791_v1, -inf }
 0x2d0   :  { %v1811_v12 = vpop.f32.mrf.mxu0  ;;  %1330 = vmax.xlane.f32.xlu1 %v2796_v10 }
 0x2d1   :  { %v2800_v24 = vadd.f32 %v1810_v9, %v2598_v4 }
 0x2d2   :  { %v1812_v42 = vpop.f32.mrf.mxu0 }
 0x2d3   :  { %3174 = vst [vmem:[#allocation12_spill] sm:$0xff] %v2800_v24  ;;  %v1813_v55 = vadd.f32 %v1812_v42, %v1811_v12  ;;  %v2805_v16 = vsel %vm1255_vm1, %v2800_v24, -inf }
 0x2d4   :  { %v1814_v19 = vpop.f32.mrf.mxu0  ;;  %1332 = vmax.xlane.f32.xlu0 %v2805_v16 }
 0x2d5   :  { %v2809_v32 = vadd.f32 %v1813_v55, %v2598_v4 }
 0x2d6   :  { %v1815_v38 = vpop.f32.mrf.mxu0 }
 0x2d7   :  { %3175 = vst [vmem:[#allocation13_spill] sm:$0xff] %v2809_v32  ;;  %v1816_v40 = vadd.f32 %v1815_v38, %v1814_v19  ;;  %v2814_v5 = vsel %vm1255_vm1, %v2809_v32, -inf }
 0x2d8   :  { %v1817_v28 = vpop.f32.mrf.mxu0  ;;  %1334 = vmax.xlane.f32.xlu1 %v2814_v5 }
 0x2d9   :  { %v2818_v46 = vadd.f32 %v1816_v40, %v2598_v4 }
 0x2da   :  { %v1818_v51 = vpop.f32.mrf.mxu0 }
 0x2db   :  { %3176 = vst [vmem:[#allocation14_spill] sm:$0xff] %v2818_v46  ;;  %v1819_v57 = vadd.f32 %v1818_v51, %v1817_v28  ;;  %v2823_v52 = vsel %vm1255_vm1, %v2818_v46, -inf }
 0x2dc   :  { %v1820_v60 = vpop.f32.mrf.mxu0  ;;  %1336 = vmax.xlane.f32.xlu0 %v2823_v52 }
 0x2dd   :  { %v2827_v33 = vadd.f32 %v1819_v57, %v2598_v4 }
 0x2de   :  { %v1821_v9 = vpop.f32.mrf.mxu0 }
 0x2df   :  { %3177 = vst [vmem:[#allocation15_spill] sm:$0xff] %v2827_v33  ;;  %v1822_v12 = vadd.f32 %v1821_v9, %v1820_v60  ;;  %v2832_v42 = vsel %vm1255_vm1, %v2827_v33, -inf }
 0x2e0   :  { %v1823_v55 = vpop.f32.mrf.mxu0  ;;  %1338 = vmax.xlane.f32.xlu1 %v2832_v42 }
 0x2e1   :  { %v2836_v19 = vadd.f32 %v1822_v12, %v2598_v4 }
 0x2e2   :  { %v1824_v38 = vpop.f32.mrf.mxu0 }
 0x2e3   :  { %3178 = vst [vmem:[#allocation16_spill] sm:$0xff] %v2836_v19  ;;  %v1825_v40 = vadd.f32 %v1824_v38, %v1823_v55  ;;  %v2841_v28 = vsel %vm1255_vm1, %v2836_v19, -inf }
 0x2e4   :  { %v1826_v51 = vpop.f32.mrf.mxu0  ;;  %1340 = vmax.xlane.f32.xlu0 %v2841_v28 }
 0x2e5   :  { %v2845_v57 = vadd.f32 %v1825_v40, %v2598_v4 }
 0x2e6   :  { %v1827_v60 = vpop.f32.mrf.mxu0 }
 0x2e7   :  { %3179 = vst [vmem:[#allocation17_spill] sm:$0xff] %v2845_v57  ;;  %v1828_v9 = vadd.f32 %v1827_v60, %v1826_v51  ;;  %v2850_v12 = vsel %vm1255_vm1, %v2845_v57, -inf }
 0x2e8   :  { %v1829_v33 = vpop.f32.mrf.mxu0  ;;  %1342 = vmax.xlane.f32.xlu1 %v2850_v12 }
 0x2e9   :  { %v2854_v55 = vadd.f32 %v1828_v9, %v2598_v4 }
 0x2ea   :  { %v1830_v38 = vpop.f32.mrf.mxu0 }
 0x2eb   :  { %3180 = vst [vmem:[#allocation18_spill] sm:$0xff] %v2854_v55  ;;  %v1831_v19 = vadd.f32 %v1830_v38, %v1829_v33  ;;  %v2859_v40 = vsel %vm1255_vm1, %v2854_v55, -inf }
 0x2ec   :  { %v1832_v46 = vpop.f32.mrf.mxu0  ;;  %1344 = vmax.xlane.f32.xlu0 %v2859_v40 }
 0x2ed   :  { %v2863_v51 = vadd.f32 %v1831_v19, %v2598_v4 }
 0x2ee   :  { %v1833_v60 = vpop.f32.mrf.mxu0 }
 0x2ef   :  { %3181 = vst [vmem:[#allocation19_spill] sm:$0xff] %v2863_v51  ;;  %v1834_v57 = vadd.f32 %v1833_v60, %v1832_v46  ;;  %v2868_v9 = vsel %vm1255_vm1, %v2863_v51, -inf }
 0x2f0   :  { %v1835_v32 = vpop.f32.mrf.mxu0  ;;  %1346 = vmax.xlane.f32.xlu1 %v2868_v9 }
 0x2f1   :  { %v2872_v33 = vadd.f32 %v1834_v57, %v2598_v4 }
 0x2f2   :  { %v1836_v38 = vpop.f32.mrf.mxu0 }
 0x2f3   :  { %3182 = vst [vmem:[#allocation20_spill] sm:$0xff] %v2872_v33  ;;  %v1837_v55 = vadd.f32 %v1836_v38, %v1835_v32  ;;  %v2877_v19 = vsel %vm1255_vm1, %v2872_v33, -inf }
 0x2f4   :  { %1348 = vmax.xlane.f32.xlu0 %v2877_v19 }
 0x2f5   :  { %v2881_v46 = vadd.f32 %v1837_v55, %v2598_v4 }
 0x2f7   :  { %3183 = vst [vmem:[#allocation21_spill] sm:$0xff] %v2881_v46  ;;  %v2886_v60 = vsel %vm1255_vm1, %v2881_v46, -inf }
 0x2f8   :  { %1350 = vmax.xlane.f32.xlu1 %v2886_v60 }
 0x305   :  { %v1289_v57 = vpop.xlane.xlu0 %1288 }
 0x306   :  { %v1352_v32 = vsub.f32 %v2607_v21, %v1289_v57 }
 0x308   :  { %v1384_v38 = vmul.f32 1.442695, %v1352_v32 }
 0x309   :  { %v1291_v51 = vpop.xlane.xlu0 %1290 }
 0x30a   :  { %1919 = vpow2.f32 %v1384_v38  ;;  %v1353_v33 = vsub.f32 %v2616_v26, %v1291_v51 }
 0x30c   :  { %v1386_v24 = vmul.f32 1.442695, %v1353_v33 }
 0x30d   :  { %v1293_v1 = vpop.xlane.xlu1 %1292 }
 0x30e   :  { %1921 = vpow2.f32 %v1386_v24  ;;  %v1354_v4 = vsub.f32 %v2625_v27, %v1293_v1 }
 0x310   :  { %v1388_v55 = vmul.f32 1.442695, %v1354_v4 }
 0x311   :  { %v1295_v36 = vpop.xlane.xlu1 %1294 }
 0x312   :  { %1923 = vpow2.f32 %v1388_v55  ;;  %v1355_v46 = vsub.f32 %v2634_v29, %v1295_v36 }
 0x314   :  { %v1390_v3 = vmul.f32 1.442695, %v1355_v46 }
 0x315   :  { %v1297_v34 = vpop.xlane.xlu0 %1296 }
 0x316   :  { %1925 = vpow2.f32 %v1390_v3  ;;  %v1356_v21 = vsub.f32 %v2643_v13, %v1297_v34 }
 0x317   :  { %v2894_v57 = vpop.eup %1919 }
 0x318   :  { %v1392_v32 = vmul.f32 1.442695, %v1356_v21  ;;  %1448 = vadd.xlane.f32.xlu0 %v2894_v57 }
 0x319   :  { %v1299_v26 = vpop.xlane.xlu1 %1298 }
 0x31a   :  { %1927 = vpow2.f32 %v1392_v32  ;;  %v1357_v24 = vsub.f32 %v2652_v23, %v1299_v26 }
 0x31b   :  { %v2898_v27 = vpop.eup %1921 }
 0x31c   :  { %v1394_v1 = vmul.f32 1.442695, %v1357_v24  ;;  %1450 = vadd.xlane.f32.xlu1 %v2898_v27 }
 0x31d   :  { %v1301_v29 = vpop.xlane.xlu0 %1300 }
 0x31e   :  { %1929 = vpow2.f32 %v1394_v1  ;;  %v1358_v3 = vsub.f32 %v2661_v14, %v1301_v29 }
 0x31f   :  { %v2902_v36 = vpop.eup %1923 }
 0x320   :  { %v1396_v13 = vmul.f32 1.442695, %v1358_v3  ;;  %1452 = vadd.xlane.f32.xlu0 %v2902_v36 }
 0x321   :  { %v1303_v34 = vpop.xlane.xlu1 %1302 }
 0x322   :  { %1931 = vpow2.f32 %v1396_v13  ;;  %v1359_v51 = vsub.f32 %v2670_v15, %v1303_v34 }
 0x323   :  { %v2906_v33 = vpop.eup %1925 }
 0x324   :  { %v1398_v23 = vmul.f32 1.442695, %v1359_v51  ;;  %1454 = vadd.xlane.f32.xlu1 %v2906_v33 }
 0x325   :  { %v1305_v46 = vpop.xlane.xlu0 %1304 }
 0x326   :  { %1933 = vpow2.f32 %v1398_v23  ;;  %v1360_v38 = vsub.f32 %v2679_v20, %v1305_v46 }
 0x327   :  { %v2910_v4 = vpop.eup %1927 }
 0x328   :  { %v1400_v14 = vmul.f32 1.442695, %v1360_v38  ;;  %1456 = vadd.xlane.f32.xlu0 %v2910_v4 }
 0x329   :  { %v1307_v55 = vpop.xlane.xlu1 %1306 }
 0x32a   :  { %1935 = vpow2.f32 %v1400_v14  ;;  %v1361_v21 = vsub.f32 %v2688_v37, %v1307_v55 }
 0x32b   :  { %v2914_v32 = vpop.eup %1929 }
 0x32c   :  { %v1402_v15 = vmul.f32 1.442695, %v1361_v21  ;;  %1458 = vadd.xlane.f32.xlu1 %v2914_v32 }
 0x32d   :  { %v1309_v26 = vpop.xlane.xlu0 %1308 }
 0x32e   :  { %1937 = vpow2.f32 %v1402_v15  ;;  %v1362_v24 = vsub.f32 %v2697_v53, %v1309_v26 }
 0x32f   :  { %v2918_v1 = vpop.eup %1931 }
 0x330   :  { %v1404_v20 = vmul.f32 1.442695, %v1362_v24  ;;  %1460 = vadd.xlane.f32.xlu0 %v2918_v1 }
 0x331   :  { %v1311_v29 = vpop.xlane.xlu1 %1310 }
 0x332   :  { %1939 = vpow2.f32 %v1404_v20  ;;  %v1363_v3 = vsub.f32 %v2706_v35, %v1311_v29 }
 0x333   :  { %v2922_v13 = vpop.eup %1933 }
 0x334   :  { %v1406_v37 = vmul.f32 1.442695, %v1363_v3  ;;  %1462 = vadd.xlane.f32.xlu1 %v2922_v13 }
 0x335   :  { %v1313_v34 = vpop.xlane.xlu0 %1312 }
 0x336   :  { %1941 = vpow2.f32 %v1406_v37  ;;  %v1364_v51 = vsub.f32 %v2715_v54, %v1313_v34 }
 0x337   :  { %v2926_v23 = vpop.eup %1935 }
 0x338   :  { %v1408_v53 = vmul.f32 1.442695, %v1364_v51  ;;  %1464 = vadd.xlane.f32.xlu0 %v2926_v23 }
 0x339   :  { %v1315_v46 = vpop.xlane.xlu1 %1314 }
 0x33a   :  { %1943 = vpow2.f32 %v1408_v53  ;;  %v1365_v38 = vsub.f32 %v2724_v47, %v1315_v46 }
 0x33b   :  { %v2930_v14 = vpop.eup %1937 }
 0x33c   :  { %v1410_v35 = vmul.f32 1.442695, %v1365_v38  ;;  %1466 = vadd.xlane.f32.xlu1 %v2930_v14 }
 0x33d   :  { %v1317_v55 = vpop.xlane.xlu0 %1316 }
 0x33e   :  { %1945 = vpow2.f32 %v1410_v35  ;;  %v1366_v21 = vsub.f32 %v2733_v6, %v1317_v55 }
 0x33f   :  { %v2934_v15 = vpop.eup %1939 }
 0x340   :  { %v1412_v54 = vmul.f32 1.442695, %v1366_v21  ;;  %1468 = vadd.xlane.f32.xlu0 %v2934_v15 }
 0x341   :  { %v1319_v26 = vpop.xlane.xlu1 %1318 }
 0x342   :  { %1947 = vpow2.f32 %v1412_v54  ;;  %v1367_v24 = vsub.f32 %v2742_v11, %v1319_v26 }
 0x343   :  { %v2938_v20 = vpop.eup %1941 }
 0x344   :  { %v1414_v47 = vmul.f32 1.442695, %v1367_v24  ;;  %1470 = vadd.xlane.f32.xlu1 %v2938_v20 }
 0x345   :  { %v1321_v29 = vpop.xlane.xlu0 %1320 }
 0x346   :  { %1949 = vpow2.f32 %v1414_v47  ;;  %v1368_v3 = vsub.f32 %v2751_v17, %v1321_v29 }
 0x347   :  { %v2942_v37 = vpop.eup %1943 }
 0x348   :  { %v1416_v6 = vmul.f32 1.442695, %v1368_v3  ;;  %1472 = vadd.xlane.f32.xlu0 %v2942_v37 }
 0x349   :  { %v1323_v34 = vpop.xlane.xlu1 %1322 }
 0x34a   :  { %1951 = vpow2.f32 %v1416_v6  ;;  %v1369_v51 = vsub.f32 %v2760_v25, %v1323_v34 }
 0x34b   :  { %v2946_v53 = vpop.eup %1945 }
 0x34c   :  { %v1418_v11 = vmul.f32 1.442695, %v1369_v51  ;;  %1474 = vadd.xlane.f32.xlu1 %v2946_v53 }
 0x34d   :  { %v1325_v46 = vpop.xlane.xlu0 %1324 }
 0x34e   :  { %1953 = vpow2.f32 %v1418_v11  ;;  %v1370_v38 = vsub.f32 %v2769_v44, %v1325_v46 }
 0x34f   :  { %v2950_v35 = vpop.eup %1947 }
 0x350   :  { %v1420_v17 = vmul.f32 1.442695, %v1370_v38  ;;  %1476 = vadd.xlane.f32.xlu0 %v2950_v35 }
 0x351   :  { %v1327_v55 = vpop.xlane.xlu1 %1326 }
 0x352   :  { %1955 = vpow2.f32 %v1420_v17  ;;  %v1371_v21 = vsub.f32 %v2778_v2, %v1327_v55 }
 0x353   :  { %v2954_v54 = vpop.eup %1949 }
 0x354   :  { %v1422_v25 = vmul.f32 1.442695, %v1371_v21  ;;  %1478 = vadd.xlane.f32.xlu1 %v2954_v54 }
 0x355   :  { %v1329_v26 = vpop.xlane.xlu0 %1328 }
 0x356   :  { %1957 = vpow2.f32 %v1422_v25  ;;  %v1372_v24 = vsub.f32 %v2787_v58, %v1329_v26 }
 0x357   :  { %v2958_v47 = vpop.eup %1951 }
 0x358   :  { %v1424_v44 = vmul.f32 1.442695, %v1372_v24  ;;  %1480 = vadd.xlane.f32.xlu0 %v2958_v47 }
 0x359   :  { %v1331_v29 = vpop.xlane.xlu1 %1330 }
 0x35a   :  { %1959 = vpow2.f32 %v1424_v44  ;;  %v1373_v3 = vsub.f32 %v2796_v10, %v1331_v29 }
 0x35b   :  { %v2962_v6 = vpop.eup %1953 }
 0x35c   :  { %v1426_v2 = vmul.f32 1.442695, %v1373_v3  ;;  %1482 = vadd.xlane.f32.xlu1 %v2962_v6 }
 0x35d   :  { %v1333_v34 = vpop.xlane.xlu0 %1332 }
 0x35e   :  { %1961 = vpow2.f32 %v1426_v2  ;;  %v1374_v51 = vsub.f32 %v2805_v16, %v1333_v34 }
 0x35f   :  { %v2966_v11 = vpop.eup %1955 }
 0x360   :  { %v1428_v58 = vmul.f32 1.442695, %v1374_v51  ;;  %1484 = vadd.xlane.f32.xlu0 %v2966_v11 }
 0x361   :  { %v1335_v46 = vpop.xlane.xlu1 %1334 }
 0x362   :  { %1963 = vpow2.f32 %v1428_v58  ;;  %v1375_v38 = vsub.f32 %v2814_v5, %v1335_v46 }
 0x363   :  { %v2970_v17 = vpop.eup %1957 }
 0x364   :  { %v1430_v10 = vmul.f32 1.442695, %v1375_v38  ;;  %1486 = vadd.xlane.f32.xlu1 %v2970_v17 }
 0x365   :  { %v1337_v55 = vpop.xlane.xlu0 %1336 }
 0x366   :  { %1965 = vpow2.f32 %v1430_v10  ;;  %v1376_v21 = vsub.f32 %v2823_v52, %v1337_v55 }
 0x367   :  { %v2974_v25 = vpop.eup %1959 }
 0x368   :  { %v1432_v16 = vmul.f32 1.442695, %v1376_v21  ;;  %1488 = vadd.xlane.f32.xlu0 %v2974_v25 }
 0x369   :  { %v1339_v26 = vpop.xlane.xlu1 %1338 }
 0x36a   :  { %1967 = vpow2.f32 %v1432_v16  ;;  %v1377_v24 = vsub.f32 %v2832_v42, %v1339_v26 }
 0x36b   :  { %v2978_v44 = vpop.eup %1961 }
 0x36c   :  { %v1434_v5 = vmul.f32 1.442695, %v1377_v24  ;;  %1490 = vadd.xlane.f32.xlu1 %v2978_v44 }
 0x36d   :  { %v1341_v29 = vpop.xlane.xlu0 %1340 }
 0x36e   :  { %1969 = vpow2.f32 %v1434_v5  ;;  %v1378_v3 = vsub.f32 %v2841_v28, %v1341_v29 }
 0x36f   :  { %v2982_v2 = vpop.eup %1963 }
 0x370   :  { %v1436_v52 = vmul.f32 1.442695, %v1378_v3  ;;  %1492 = vadd.xlane.f32.xlu0 %v2982_v2 }
 0x371   :  { %v1343_v34 = vpop.xlane.xlu1 %1342 }
 0x372   :  { %1971 = vpow2.f32 %v1436_v52  ;;  %v1379_v51 = vsub.f32 %v2850_v12, %v1343_v34 }
 0x373   :  { %v2986_v58 = vpop.eup %1965 }
 0x374   :  { %v1438_v42 = vmul.f32 1.442695, %v1379_v51  ;;  %1494 = vadd.xlane.f32.xlu1 %v2986_v58 }
 0x375   :  { %v1345_v46 = vpop.xlane.xlu0 %1344 }
 0x376   :  { %1973 = vpow2.f32 %v1438_v42  ;;  %v1380_v38 = vsub.f32 %v2859_v40, %v1345_v46 }
 0x377   :  { %v2990_v10 = vpop.eup %1967 }
 0x378   :  { %v1440_v28 = vmul.f32 1.442695, %v1380_v38  ;;  %1496 = vadd.xlane.f32.xlu0 %v2990_v10 }
 0x379   :  { %v1347_v55 = vpop.xlane.xlu1 %1346 }
 0x37a   :  { %1975 = vpow2.f32 %v1440_v28  ;;  %v1381_v21 = vsub.f32 %v2868_v9, %v1347_v55 }
 0x37b   :  { %v2994_v16 = vpop.eup %1969 }
 0x37c   :  { %v1442_v12 = vmul.f32 1.442695, %v1381_v21  ;;  %1498 = vadd.xlane.f32.xlu1 %v2994_v16 }
 0x37d   :  { %v1349_v26 = vpop.xlane.xlu0 %1348 }
 0x37e   :  { %1977 = vpow2.f32 %v1442_v12  ;;  %v1382_v24 = vsub.f32 %v2877_v19, %v1349_v26 }
 0x37f   :  { %v2998_v5 = vpop.eup %1971 }
 0x380   :  { %v1444_v40 = vmul.f32 1.442695, %v1382_v24  ;;  %1500 = vadd.xlane.f32.xlu0 %v2998_v5 }
 0x381   :  { %v1351_v29 = vpop.xlane.xlu1 %1350 }
 0x382   :  { %1979 = vpow2.f32 %v1444_v40  ;;  %v1383_v3 = vsub.f32 %v2886_v60, %v1351_v29 }
 0x383   :  { %v3002_v52 = vpop.eup %1973 }
 0x384   :  { %v1446_v9 = vmul.f32 1.442695, %v1383_v3  ;;  %1502 = vadd.xlane.f32.xlu1 %v3002_v52 }
 0x386   :  { %1981 = vpow2.f32 %v1446_v9 }
 0x387   :  { %v3005_v34 = vpop.eup %1975 }
 0x388   :  { %1504 = vadd.xlane.f32.xlu0 %v3005_v34 }
 0x38b   :  { %v3008_v19 = vpop.eup %1977 }
 0x38c   :  { %1506 = vadd.xlane.f32.xlu1 %v3008_v19 }
 0x38f   :  { %v3011_v51 = vpop.eup %1979 }
 0x390   :  { %1508 = vadd.xlane.f32.xlu0 %v3011_v51 }
 0x393   :  { %v3014_v42 = vpop.eup %1981 }
 0x394   :  { %1510 = vadd.xlane.f32.xlu1 %v3014_v42 }
 0x3a1   :  { %v1449_v60 = vpop.xlane.xlu0 %1448 }
 0x3a2   :  { %1983 = vrcp.f32 %v1449_v60 }
 0x3a5   :  { %v1451_v46 = vpop.xlane.xlu1 %1450 }
 0x3a6   :  { %1985 = vrcp.f32 %v1451_v46 }
 0x3a9   :  { %v1453_v38 = vpop.xlane.xlu0 %1452 }
 0x3aa   :  { %1987 = vrcp.f32 %v1453_v38 }
 0x3ad   :  { %v1455_v28 = vpop.xlane.xlu1 %1454 }
 0x3ae   :  { %1989 = vrcp.f32 %v1455_v28 }
 0x3af   :  { %v1984_v55 = vpop.eup %1983 }
 0x3b0   :  { %v1513_v21 = vmul.f32 %v1984_v55, %v2894_v57 }
 0x3b1   :  { %v1457_v12 = vpop.xlane.xlu0 %1456 }
 0x3b2   :  { %v1576_v26 = vsel %vm1255_vm1, %v1513_v21, %v2602_v50  ;;  %1991 = vrcp.f32 %v1457_v12 }
 0x3b3   :  { %v1986_v24 = vpop.eup %1985  ;;  %1608 = vst [vmem:[#allocation5] sm:$0xff] %v1576_v26 }
 0x3b4   :  { %v1515_v40 = vmul.f32 %v1986_v24, %v2898_v27 }
 0x3b5   :  { %v1459_v29 = vpop.xlane.xlu1 %1458 }
 0x3b6   :  { %v1577_v3 = vsel %vm1255_vm1, %v1515_v40, %v2611_v48  ;;  %1993 = vrcp.f32 %v1459_v29 }
 0x3b7   :  { %v1988_v9 = vpop.eup %1987  ;;  %1609 = vst [vmem:[#allocation5 + $0x8] sm:$0xff] %v1577_v3 }
 0x3b8   :  { %v1517_v57 = vmul.f32 %v1988_v9, %v2902_v36 }
 0x3b9   :  { %v1461_v60 = vpop.xlane.xlu0 %1460 }
 0x3ba   :  { %v1578_v50 = vsel %vm1255_vm1, %v1517_v57, %v2620_v59  ;;  %1995 = vrcp.f32 %v1461_v60 }
 0x3bb   :  { %v1990_v46 = vpop.eup %1989  ;;  %1610 = vst [vmem:[#allocation5 + $0x10] sm:$0xff] %v1578_v50 }
 0x3bc   :  { %v1519_v27 = vmul.f32 %v1990_v46, %v2906_v33 }
 0x3bd   :  { %v1463_v38 = vpop.xlane.xlu1 %1462 }
 0x3be   :  { %v1579_v48 = vsel %vm1255_vm1, %v1519_v27, %v2629_v63  ;;  %1997 = vrcp.f32 %v1463_v38 }
 0x3bf   :  { %v1992_v28 = vpop.eup %1991  ;;  %1611 = vst [vmem:[#allocation5 + $0x18] sm:$0xff] %v1579_v48 }
 0x3c0   :  { %v1521_v36 = vmul.f32 %v1992_v28, %v2910_v4 }
 0x3c1   :  { %v1465_v55 = vpop.xlane.xlu0 %1464 }
 0x3c2   :  { %v1580_v59 = vsel %vm1255_vm1, %v1521_v36, %v2638_v8  ;;  %1999 = vrcp.f32 %v1465_v55 }
 0x3c3   :  { %v1994_v21 = vpop.eup %1993  ;;  %1612 = vst [vmem:[#allocation5 + $0x20] sm:$0xff] %v1580_v59 }
 0x3c4   :  { %v1523_v33 = vmul.f32 %v1994_v21, %v2914_v32 }
 0x3c5   :  { %v1467_v12 = vpop.xlane.xlu1 %1466 }
 0x3c6   :  { %v1581_v63 = vsel %vm1255_vm1, %v1523_v33, %v2647_v41  ;;  %2001 = vrcp.f32 %v1467_v12 }
 0x3c7   :  { %v1996_v26 = vpop.eup %1995  ;;  %1613 = vst [vmem:[#allocation5 + $0x28] sm:$0xff] %v1581_v63 }
 0x3c8   :  { %v1525_v4 = vmul.f32 %v1996_v26, %v2918_v1 }
 0x3c9   :  { %v1469_v24 = vpop.xlane.xlu0 %1468 }
 0x3ca   :  { %v1582_v8 = vsel %vm1255_vm1, %v1525_v4, %v2656_v31  ;;  %2003 = vrcp.f32 %v1469_v24 }
 0x3cb   :  { %v1998_v40 = vpop.eup %1997  ;;  %1614 = vst [vmem:[#allocation5 + $0x30] sm:$0xff] %v1582_v8 }
 0x3cc   :  { %v1527_v32 = vmul.f32 %v1998_v40, %v2922_v13 }
 0x3cd   :  { %v1471_v29 = vpop.xlane.xlu1 %1470 }
 0x3ce   :  { %v1583_v41 = vsel %vm1255_vm1, %v1527_v32, %v2665_v0  ;;  %2005 = vrcp.f32 %v1471_v29  ;;  %v3184_v32 = vld [vmem:[#allocation8_spill] sm:$0xff] }
 0x3cf   :  { %v2000_v3 = vpop.eup %1999  ;;  %1615 = vst [vmem:[#allocation5 + $0x38] sm:$0xff] %v1583_v41 }
 0x3d0   :  { %v1529_v1 = vmul.f32 %v2000_v3, %v2926_v23  ;;  %v3185_v3 = vld [vmem:[#allocation9_spill] sm:$0xff] }
 0x3d1   :  { %v1473_v9 = vpop.xlane.xlu0 %1472 }
 0x3d2   :  { %v1584_v31 = vsel %vm1255_vm1, %v1529_v1, %v2674_v62  ;;  %2007 = vrcp.f32 %v1473_v9 }
 0x3d3   :  { %v2002_v57 = vpop.eup %2001  ;;  %1616 = vst [vmem:[#allocation5 + $0x40] sm:$0xff] %v1584_v31  ;;  %v3186_v31 = vld [vmem:[#allocation10_spill] sm:$0xff] }
 0x3d4   :  { %v1531_v13 = vmul.f32 %v2002_v57, %v2930_v14 }
 0x3d5   :  { %v1475_v60 = vpop.xlane.xlu1 %1474 }
 0x3d6   :  { %v1585_v0 = vsel %vm1255_vm1, %v1531_v13, %v2683_v30  ;;  %2009 = vrcp.f32 %v1475_v60 }
 0x3d7   :  { %v2004_v50 = vpop.eup %2003  ;;  %1617 = vst [vmem:[#allocation5 + $0x48] sm:$0xff] %v1585_v0  ;;  %v3187_v0 = vld [vmem:[#allocation11_spill] sm:$0xff] }
 0x3d8   :  { %v1533_v23 = vmul.f32 %v2004_v50, %v2934_v15 }
 0x3d9   :  { %v1477_v46 = vpop.xlane.xlu0 %1476 }
 0x3da   :  { %v1586_v62 = vsel %vm1255_vm1, %v1533_v23, %v2692_v39  ;;  %2011 = vrcp.f32 %v1477_v46 }
 0x3db   :  { %v2006_v27 = vpop.eup %2005  ;;  %1618 = vst [vmem:[#allocation5 + $0x50] sm:$0xff] %v1586_v62  ;;  %v3188_v62 = vld [vmem:[#allocation12_spill] sm:$0xff] }
 0x3dc   :  { %v1535_v14 = vmul.f32 %v2006_v27, %v2938_v20 }
 0x3dd   :  { %v1479_v38 = vpop.xlane.xlu1 %1478 }
 0x3de   :  { %v1587_v30 = vsel %vm1255_vm1, %v1535_v14, %v2701_v43  ;;  %2013 = vrcp.f32 %v1479_v38 }
 0x3df   :  { %v2008_v48 = vpop.eup %2007  ;;  %1619 = vst [vmem:[#allocation5 + $0x58] sm:$0xff] %v1587_v30  ;;  %v3189_v30 = vld [vmem:[#allocation13_spill] sm:$0xff] }
 0x3e0   :  { %v1537_v15 = vmul.f32 %v2008_v48, %v2942_v37 }
 0x3e1   :  { %v1481_v28 = vpop.xlane.xlu0 %1480 }
 0x3e2   :  { %v1588_v39 = vsel %vm1255_vm1, %v1537_v15, %v2710_v49  ;;  %2015 = vrcp.f32 %v1481_v28 }
 0x3e3   :  { %v2010_v36 = vpop.eup %2009  ;;  %1620 = vst [vmem:[#allocation5 + $0x60] sm:$0xff] %v1588_v39  ;;  %v3190_v39 = vld [vmem:[#allocation14_spill] sm:$0xff] }
 0x3e4   :  { %v1539_v20 = vmul.f32 %v2010_v36, %v2946_v53 }
 0x3e5   :  { %v1483_v55 = vpop.xlane.xlu1 %1482 }
 0x3e6   :  { %v1589_v43 = vsel %vm1255_vm1, %v1539_v20, %v2719_v56  ;;  %2017 = vrcp.f32 %v1483_v55 }
 0x3e7   :  { %v2012_v59 = vpop.eup %2011  ;;  %1621 = vst [vmem:[#allocation5 + $0x68] sm:$0xff] %v1589_v43  ;;  %v3191_v43 = vld [vmem:[#allocation15_spill] sm:$0xff] }
 0x3e8   :  { %v1541_v37 = vmul.f32 %v2012_v59, %v2950_v35 }
 0x3e9   :  { %v1485_v21 = vpop.xlane.xlu0 %1484 }
 0x3ea   :  { %v1590_v49 = vsel %vm1255_vm1, %v1541_v37, %v2728_v61  ;;  %2019 = vrcp.f32 %v1485_v21 }
 0x3eb   :  { %v2014_v33 = vpop.eup %2013  ;;  %1622 = vst [vmem:[#allocation5 + $0x70] sm:$0xff] %v1590_v49  ;;  %v3192_v49 = vld [vmem:[#allocation16_spill] sm:$0xff] }
 0x3ec   :  { %v1543_v53 = vmul.f32 %v2014_v33, %v2954_v54 }
 0x3ed   :  { %v1487_v12 = vpop.xlane.xlu1 %1486 }
 0x3ee   :  { %v1591_v56 = vsel %vm1255_vm1, %v1543_v53, %v2737_v7  ;;  %2021 = vrcp.f32 %v1487_v12 }
 0x3ef   :  { %v2016_v63 = vpop.eup %2015  ;;  %1623 = vst [vmem:[#allocation5 + $0x78] sm:$0xff] %v1591_v56  ;;  %v3193_v56 = vld [vmem:[#allocation17_spill] sm:$0xff] }
 0x3f0   :  { %v1545_v35 = vmul.f32 %v2016_v63, %v2958_v47 }
 0x3f1   :  { %v1489_v26 = vpop.xlane.xlu0 %1488 }
 0x3f2   :  { %v1592_v61 = vsel %vm1255_vm1, %v1545_v35, %v2746_v22  ;;  %2023 = vrcp.f32 %v1489_v26  ;;  %v3194_v26 = vld [vmem:[#allocation18_spill] sm:$0xff] }
 0x3f3   :  { %v2018_v4 = vpop.eup %2017  ;;  %1624 = vst [vmem:[#allocation5 + $0x80] sm:$0xff] %v1592_v61 }
 0x3f4   :  { %v1547_v54 = vmul.f32 %v2018_v4, %v2962_v6 }
 0x3f5   :  { %v1491_v24 = vpop.xlane.xlu1 %1490 }
 0x3f6   :  { %v1593_v7 = vsel %vm1255_vm1, %v1547_v54, %v2755_v18  ;;  %2025 = vrcp.f32 %v1491_v24  ;;  %v3195_v24 = vld [vmem:[#allocation19_spill] sm:$0xff] }
 0x3f7   :  { %v2020_v8 = vpop.eup %2019  ;;  %1625 = vst [vmem:[#allocation5 + $0x88] sm:$0xff] %v1593_v7 }
 0x3f8   :  { %v1549_v47 = vmul.f32 %v2020_v8, %v2966_v11 }
 0x3f9   :  { %v1493_v40 = vpop.xlane.xlu0 %1492 }
 0x3fa   :  { %v1594_v22 = vsel %vm1255_vm1, %v1549_v47, %v3184_v32  ;;  %2027 = vrcp.f32 %v1493_v40  ;;  %v3196_v47 = vld [vmem:[#allocation20_spill] sm:$0xff] }
 0x3fb   :  { %v2022_v29 = vpop.eup %2021  ;;  %1626 = vst [vmem:[#allocation5 + $0x90] sm:$0xff] %v1594_v22 }
 0x3fc   :  { %v1551_v6 = vmul.f32 %v2022_v29, %v2970_v17 }
 0x3fd   :  { %v1495_v41 = vpop.xlane.xlu1 %1494 }
 0x3fe   :  { %v1595_v18 = vsel %vm1255_vm1, %v1551_v6, %v3185_v3  ;;  %2029 = vrcp.f32 %v1495_v41 }
 0x3ff   :  { %v2024_v1 = vpop.eup %2023  ;;  %1627 = vst [vmem:[#allocation5 + $0x98] sm:$0xff] %v1595_v18 }
 0x400   :  { %v1553_v11 = vmul.f32 %v2024_v1, %v2974_v25 }
 0x401   :  { %v1497_v9 = vpop.xlane.xlu0 %1496 }
 0x402   :  { %v1596_v57 = vsel %vm1255_vm1, %v1553_v11, %v3186_v31  ;;  %2031 = vrcp.f32 %v1497_v9 }
 0x403   :  { %v2026_v13 = vpop.eup %2025  ;;  %1628 = vst [vmem:[#allocation5 + $0xa0] sm:$0xff] %v1596_v57 }
 0x404   :  { %v1555_v17 = vmul.f32 %v2026_v13, %v2978_v44 }
 0x405   :  { %v1499_v60 = vpop.xlane.xlu1 %1498 }
 0x406   :  { %v1597_v50 = vsel %vm1255_vm1, %v1555_v17, %v3187_v0  ;;  %2033 = vrcp.f32 %v1499_v60 }
 0x407   :  { %v2028_v23 = vpop.eup %2027  ;;  %1629 = vst [vmem:[#allocation5 + $0xa8] sm:$0xff] %v1597_v50 }
 0x408   :  { %v1557_v25 = vmul.f32 %v2028_v23, %v2982_v2 }
 0x409   :  { %v1501_v46 = vpop.xlane.xlu0 %1500 }
 0x40a   :  { %v1598_v27 = vsel %vm1255_vm1, %v1557_v25, %v3188_v62  ;;  %2035 = vrcp.f32 %v1501_v46 }
 0x40b   :  { %v2030_v14 = vpop.eup %2029  ;;  %1630 = vst [vmem:[#allocation5 + $0xb0] sm:$0xff] %v1598_v27 }
 0x40c   :  { %v1559_v44 = vmul.f32 %v2030_v14, %v2986_v58 }
 0x40d   :  { %v1503_v38 = vpop.xlane.xlu1 %1502 }
 0x40e   :  { %v1599_v48 = vsel %vm1255_vm1, %v1559_v44, %v3189_v30  ;;  %2037 = vrcp.f32 %v1503_v38 }
 0x40f   :  { %v2032_v15 = vpop.eup %2031  ;;  %1631 = vst [vmem:[#allocation5 + $0xb8] sm:$0xff] %v1599_v48 }
 0x410   :  { %v1561_v2 = vmul.f32 %v2032_v15, %v2990_v10 }
 0x411   :  { %v1505_v28 = vpop.xlane.xlu0 %1504 }
 0x412   :  { %v1600_v36 = vsel %vm1255_vm1, %v1561_v2, %v3190_v39  ;;  %2039 = vrcp.f32 %v1505_v28 }
 0x413   :  { %v2034_v20 = vpop.eup %2033  ;;  %1632 = vst [vmem:[#allocation5 + $0xc0] sm:$0xff] %v1600_v36 }
 0x414   :  { %v1563_v58 = vmul.f32 %v2034_v20, %v2994_v16 }
 0x415   :  { %v1507_v55 = vpop.xlane.xlu1 %1506 }
 0x416   :  { %v1601_v59 = vsel %vm1255_vm1, %v1563_v58, %v3191_v43  ;;  %2041 = vrcp.f32 %v1507_v55 }
 0x417   :  { %v2036_v37 = vpop.eup %2035  ;;  %1633 = vst [vmem:[#allocation5 + $0xc8] sm:$0xff] %v1601_v59 }
 0x418   :  { %v1565_v10 = vmul.f32 %v2036_v37, %v2998_v5 }
 0x419   :  { %v1509_v21 = vpop.xlane.xlu0 %1508 }
 0x41a   :  { %v1602_v33 = vsel %vm1255_vm1, %v1565_v10, %v3192_v49  ;;  %2043 = vrcp.f32 %v1509_v21 }
 0x41b   :  { %v2038_v53 = vpop.eup %2037  ;;  %1634 = vst [vmem:[#allocation5 + $0xd0] sm:$0xff] %v1602_v33 }
 0x41c   :  { %v1567_v16 = vmul.f32 %v2038_v53, %v3002_v52 }
 0x41d   :  { %v1511_v12 = vpop.xlane.xlu1 %1510 }
 0x41e   :  { %v1603_v63 = vsel %vm1255_vm1, %v1567_v16, %v3193_v56  ;;  %2045 = vrcp.f32 %v1511_v12 }
 0x41f   :  { %v2040_v35 = vpop.eup %2039  ;;  %1635 = vst [vmem:[#allocation5 + $0xd8] sm:$0xff] %v1603_v63 }
 0x420   :  { %v1569_v5 = vmul.f32 %v2040_v35, %v3005_v34 }
 0x422   :  { %v1604_v61 = vsel %vm1255_vm1, %v1569_v5, %v3194_v26 }
 0x423   :  { %v2042_v4 = vpop.eup %2041  ;;  %1636 = vst [vmem:[#allocation5 + $0xe0] sm:$0xff] %v1604_v61 }
 0x424   :  { %v1571_v54 = vmul.f32 %v2042_v4, %v3008_v19  ;;  %v3197_v19 = vld [vmem:[#allocation21_spill] sm:$0xff] }
 0x426   :  { %v1605_v52 = vsel %vm1255_vm1, %v1571_v54, %v3195_v24 }
 0x427   :  { %v2044_v7 = vpop.eup %2043  ;;  %1637 = vst [vmem:[#allocation5 + $0xe8] sm:$0xff] %v1605_v52 }
 0x428   :  { %v1573_v8 = vmul.f32 %v2044_v7, %v3011_v51 }
 0x42a   :  { %v1606_v34 = vsel %vm1255_vm1, %v1573_v8, %v3196_v47 }
 0x42b   :  { %v2046_v40 = vpop.eup %2045  ;;  %1638 = vst [vmem:[#allocation5 + $0xf0] sm:$0xff] %v1606_v34 }
 0x42c   :  { %v1575_v32 = vmul.f32 %v2046_v40, %v3014_v42 }
 0x42e   :  { %v1607_v22 = vsel %vm1255_vm1, %v1575_v32, %v3197_v19 }
 0x42f   :  { %1639 = vst [vmem:[#allocation5 + $0xf8] sm:$0xff] %v1607_v22 }
 0x430   :  { %2078 = shalt.err (!%p2075_p9)
}
 0x431   :  { %s2096_s21 = smov 128   ;;  %s2097_s22 = smov 8  }
 0x432   :  { %1651 = dma.vmem_to_hbm [thread:$0]  %s1646_s20, 4096, %s3155_s7, [#allocation4], %s2096_s21, %s2096_s21, %s2097_s22  }
 0x433   :  { %2089 = dma.done.wait [#allocation4], 4096  }
 0x434   :  { %2090 = vsyncadd [#allocation4], 4294963200 }
 0x435   :  { %1655 = vsyncpa [#allocation3], 1 }
 0x436   :  { %1656 = vsyncpa [#allocation4], 1 }

</bundles_post_ra>
